<compile_context>
chip_gen: v7x
topology: tpu7x:2x2x1
jax: 0.10.0
libtpu: 0.0.40
codegen_flags: <defaults>
</compile_context>

<pallas_src>
import math
from itertools import chain

import numpy as np
import jax
import jax.numpy as jnp
from jax import lax
from jax.experimental import pallas as pl
from jax.experimental.pallas import tpu as pltpu

# ----------------------------- configuration --------------------------------
HIDDEN = 128            # bert hidden size (lane aligned)
NUM_HEADS = 2
HEAD_DIM = HIDDEN // NUM_HEADS
INTERMEDIATE = 256
NUM_BERT_LAYERS = 2
MAX_POS = 64            # max_position_embeddings
WP_VOCAB = 300          # wordpiece vocab size
CLS_ID, SEP_ID, WP_PAD_ID, UNK_ID = 101, 102, 0, 103
LN_EPS = 1e-12

WORD_VOCAB = 20         # word-level Vocabulary size
WORD_PAD_IDX = 0
WORD_UNK_IDX = 1
LAYERS = [-1]           # layers='-1'
POOL_METHOD = "first"   # pool_method='first'
INCLUDE_CLS_SEP = False


# ----------------------------- in-kernel helpers -----------------------------
def _layernorm(x, g, b):
    mu = jnp.mean(x, axis=-1, keepdims=True)
    var = jnp.mean(jnp.square(x - mu), axis=-1, keepdims=True)
    return (x - mu) * lax.rsqrt(var + LN_EPS) * g + b


def _gelu(x):
    # TODO(synk): HF BERT default 'gelu' is the exact erf form; tanh approx
    # differs at the ~1e-3 level but maps cleanly onto the EUP.
    c = math.sqrt(2.0 / math.pi)
    return 0.5 * x * (1.0 + jnp.tanh(c * (x + 0.044715 * x * x * x)))


# ------------------------- fused encoder + pool kernel ------------------------
def fused_bert_kernel(emb_ref, amask_ref, embln_ref,
                      a_ref, c_ref, w1_ref, b1_ref, w2_ref,
                      vecs_ref, onehot_ref, out_ref):
    # per-grid-step shapes: emb (S, H), amask (1, S), onehot (Lp, S)
    S, H = emb_ref.shape

    # embedding layernorm
    e = embln_ref[...]                                        # (2, H)
    x = _layernorm(emb_ref[...], e[0:1, :], e[1:2, :])        # (S, H) f32

    # additive mask broadcast hoisted out of the layer/head loops
    amask = jnp.broadcast_to(amask_ref[...], (S, S))          # (S, S) f32
    onehot = onehot_ref[...]                                  # (Lp, S) bf16

    # only keep hidden states actually selected by LAYERS
    need = {l % (NUM_BERT_LAYERS + 1) for l in LAYERS}
    kept = {}
    if 0 in need:
        kept[0] = x

    for l in range(NUM_BERT_LAYERS):                          # unrolled
        vecs = vecs_ref[l]                                    # (6, H) f32
        bo, ln1g, ln1b = vecs[0:1, :], vecs[1:2, :], vecs[2:3, :]
        b2, ln2g, ln2b = vecs[3:4, :], vecs[4:5, :], vecs[5:6, :]

        xb = x.astype(jnp.bfloat16)

        # Head-batched attention through host-folded matrices:
        #   scores_h = x A_h x^T   (attention scale already folded into A_h)
        #   attn     = sum_h softmax(scores_h + mask) (x C_h) + bo'
        # Per-head slices of xa / xc are at lane offsets 0 and 128
        # (vreg aligned); no 64-lane slices, no concatenate.
        xa = jnp.dot(xb, a_ref[l],
                     preferred_element_type=jnp.float32).astype(jnp.bfloat16)
        xc = jnp.dot(xb, c_ref[l],
                     preferred_element_type=jnp.float32).astype(jnp.bfloat16)

        attn = None
        for h in range(NUM_HEADS):                            # 2 heads, aligned
            lo = h * H
            s = lax.dot_general(xa[:, lo:lo + H], xb,
                                (((1,), (1,)), ((), ())),
                                preferred_element_type=jnp.float32)  # (S, S)
            s = s + amask
            s = s - jnp.max(s, axis=-1, keepdims=True)
            p = jnp.exp(s)
            # EUP approximate reciprocal (~1e-3 rel.); use approx=False if
            # bit-level parity with a reference is required.
            p = p * pl.reciprocal(jnp.sum(p, axis=-1, keepdims=True),
                                  approx=True)
            ctx = jnp.dot(p.astype(jnp.bfloat16), xc[:, lo:lo + H],
                          preferred_element_type=jnp.float32)        # (S, H)
            attn = ctx if attn is None else attn + ctx

        h1 = _layernorm(x + attn + bo, ln1g, ln1b)

        # --- feed-forward ---
        ff = jnp.dot(h1.astype(jnp.bfloat16), w1_ref[l],
                     preferred_element_type=jnp.float32) + b1_ref[l]
        ff = _gelu(ff)
        ff = jnp.dot(ff.astype(jnp.bfloat16), w2_ref[l],
                     preferred_element_type=jnp.float32) + b2
        x = _layernorm(h1 + ff, ln2g, ln2b)

        if (l + 1) in need:
            kept[l + 1] = x

    # --- 'first' word-piece pooling: one bf16 MXU matmul per selected layer
    #     (word mask is folded into the one-hot; padded rows stay zero) ---
    for li, l in enumerate(LAYERS):
        hsel = kept[l % (NUM_BERT_LAYERS + 1)]
        out_ref[li] = jnp.dot(onehot, hsel.astype(jnp.bfloat16),
                              preferred_element_type=jnp.float32)


def fused_bert_encode(emb, amask, embln, params, onehot):
    B, S, H = emb.shape
    Lp = onehot.shape[1]
    NSEL = len(LAYERS)

    def resident(a):
        # whole array as one block, constant index -> stays VMEM-resident
        nd = a.ndim
        return pl.BlockSpec(a.shape, lambda b, _nd=nd: (0,) * _nd)

    in_specs = [
        pl.BlockSpec((None, S, H), lambda b: (b, 0, 0)),    # emb (per batch)
        pl.BlockSpec((None, 1, S), lambda b: (b, 0, 0)),    # additive mask
        resident(embln),
        resident(params["A"]),
        resident(params["C"]),
        resident(params["w1"]),
        resident(params["b1"]),
        resident(params["w2"]),
        resident(params["vecs"]),
        pl.BlockSpec((None, Lp, S), lambda b: (b, 0, 0)),   # pooling one-hot
    ]
    out_specs = pl.BlockSpec((NSEL, None, Lp, H), lambda b: (0, b, 0, 0))

    # At these sizes total live VMEM is <1 MiB, well under the default scoped
    # limit on v5e/v6e/v7x; for much larger B/S, shrink blocks / set
    # vmem_limit_bytes explicitly.
    return pl.pallas_call(
        fused_bert_kernel,
        out_shape=jax.ShapeDtypeStruct((NSEL, B, Lp, H), jnp.float32),
        grid_spec=pltpu.PrefetchScalarGridSpec(
            num_scalar_prefetch=0, grid=(B,),
            in_specs=in_specs, out_specs=out_specs),
        compiler_params=pltpu.CompilerParams(
            dimension_semantics=("parallel",)),
    )(emb, amask, embln, params["A"], params["C"],
      params["w1"], params["b1"], params["w2"], params["vecs"], onehot)


# --------------------------- parameters / vocab -------------------------------
def init_params(key):
    def normal(k, shape):
        return 0.02 * jax.random.normal(k, shape, jnp.float32)

    keys = jax.random.split(key, 9)

    # raw per-layer attention weights (standard BERT parameterization)
    wq = np.asarray(normal(keys[3], (NUM_BERT_LAYERS, HIDDEN, HIDDEN)))
    wk = np.asarray(normal(keys[4], (NUM_BERT_LAYERS, HIDDEN, HIDDEN)))
    wv = np.asarray(normal(keys[5], (NUM_BERT_LAYERS, HIDDEN, HIDDEN)))
    wo = np.asarray(normal(keys[6], (NUM_BERT_LAYERS, HIDDEN, HIDDEN)))
    bv = np.zeros((NUM_BERT_LAYERS, HIDDEN), np.float32)
    bo = np.zeros((NUM_BERT_LAYERS, HIDDEN), np.float32)
    # TODO(synk): query/key projection biases are zero in this synthetic init;
    # a nonzero query bias would add a per-key score term not captured by A.

    # Host-side folding (review items: no in-kernel scale multiply, no
    # lane-unaligned per-head slices / concat):
    #   A[l, :, h*H:(h+1)*H] = Wq_h @ Wk_h^T / sqrt(Dh)
    #   C[l, :, h*H:(h+1)*H] = Wv_h @ Wo_h
    #   bo'[l]               = bo + sum_h bv_h @ Wo_h    (exact)
    scale = 1.0 / math.sqrt(HEAD_DIM)
    A = np.zeros((NUM_BERT_LAYERS, HIDDEN, NUM_HEADS * HIDDEN), np.float32)
    C = np.zeros((NUM_BERT_LAYERS, HIDDEN, NUM_HEADS * HIDDEN), np.float32)
    bo_fold = bo.copy()
    for l in range(NUM_BERT_LAYERS):
        for h in range(NUM_HEADS):
            cs = slice(h * HEAD_DIM, (h + 1) * HEAD_DIM)
            os = slice(h * HIDDEN, (h + 1) * HIDDEN)
            A[l, :, os] = (wq[l][:, cs] @ wk[l][:, cs].T) * scale
            C[l, :, os] = wv[l][:, cs] @ wo[l][cs, :]
            bo_fold[l] += bv[l, cs] @ wo[l][cs, :]

    # packed bias / LN slab: rows [bo', ln1_g, ln1_b, b2, ln2_g, ln2_b]
    vecs = np.zeros((NUM_BERT_LAYERS, 6, HIDDEN), np.float32)
    vecs[:, 0, :] = bo_fold
    vecs[:, 1, :] = 1.0   # ln1 gamma
    vecs[:, 4, :] = 1.0   # ln2 gamma

    params = {
        "word_emb": normal(keys[0], (WP_VOCAB, HIDDEN)),
        "pos_emb": normal(keys[1], (MAX_POS, HIDDEN)),
        "type_emb": normal(keys[2], (2, HIDDEN)),
        "emb_ln_g": jnp.ones((HIDDEN,), jnp.float32),
        "emb_ln_b": jnp.zeros((HIDDEN,), jnp.float32),
        # matmul weights in bf16 (MXU boundary)
        "A": jnp.asarray(A, jnp.bfloat16),
        "C": jnp.asarray(C, jnp.bfloat16),
        "w1": normal(keys[7], (NUM_BERT_LAYERS, HIDDEN, INTERMEDIATE)
                     ).astype(jnp.bfloat16),
        "b1": jnp.zeros((NUM_BERT_LAYERS, 1, INTERMEDIATE), jnp.float32),
        "w2": normal(keys[8], (NUM_BERT_LAYERS, INTERMEDIATE, HIDDEN)
                     ).astype(jnp.bfloat16),
        "vecs": jnp.asarray(vecs),
    }
    return params


def build_synthetic_vocab(seed=0):
    # Synthetic stand-in for tokenizer.tokenize / convert_tokens_to_ids.
    rng = np.random.RandomState(seed)
    word_to_wordpieces, word_pieces_lengths = [], []
    for idx in range(WORD_VOCAB):
        if idx == WORD_PAD_IDX:
            pieces = [WP_PAD_ID]        # '[PAD]'
        elif idx == WORD_UNK_IDX:
            pieces = [UNK_ID]           # '[UNK]'
        else:
            n = int(rng.randint(1, 4))  # each word -> 1..3 wordpieces
            pieces = [int(p) for p in rng.randint(110, WP_VOCAB, size=n)]
        word_to_wordpieces.append(pieces)
        word_pieces_lengths.append(len(pieces))
    return word_to_wordpieces, np.asarray(word_pieces_lengths, dtype=np.int64)


# ------------------------------ forward pass ---------------------------------
def bert_word_model_forward(words_np, params, word_to_wordpieces,
                            word_pieces_lengths):
    """Mirrors _BertWordModel.forward (pool_method='first', layers=[-1],
    include_cls_sep=False, pooled_cls=False, auto_truncate=False)."""
    B, L = words_np.shape
    word_mask = words_np != WORD_PAD_IDX                       # (B, L)
    seq_len = word_mask.sum(-1)                                # (B,)
    bwpl = word_pieces_lengths[words_np] * word_mask           # masked_fill(0)
    wp_lens = bwpl.sum(-1)                                     # (B,)
    max_wp_len = int(wp_lens.max())
    assert max_wp_len + 2 <= MAX_POS
    S = max_wp_len + 2

    # TODO(synk): data-dependent word-piece sequence assembly is an inherently
    # host-side python loop (exactly as in the reference); kept in numpy.
    word_pieces = np.zeros((B, S), dtype=np.int32)
    attn = np.zeros((B, S), dtype=np.int32)
    for i in range(B):
        pieces = list(chain(*[word_to_wordpieces[int(w)]
                              for w in words_np[i, :seq_len[i]]]))
        word_pieces[i, 1:wp_lens[i] + 1] = np.asarray(pieces, dtype=np.int32)
        attn[i, :wp_lens[i] + 2] = 1
    word_pieces[:, 0] = CLS_ID
    word_pieces[np.arange(B), wp_lens + 1] = SEP_ID
    token_type_ids = np.zeros_like(word_pieces)    # '[SEP]' not in word vocab

    # Pad seq to a multiple of 8 (sublane alignment); padded positions carry
    # attn_mask = 0 so valid outputs are unchanged.
    S_pad = max(8, ((S + 7) // 8) * 8)
    pad = S_pad - S
    word_pieces = np.pad(word_pieces, ((0, 0), (0, pad)))
    attn = np.pad(attn, ((0, 0), (0, pad)))
    token_type_ids = np.pad(token_type_ids, ((0, 0), (0, pad)))

    ids = jnp.asarray(word_pieces)
    tt = jnp.asarray(token_type_ids)
    amask = ((1.0 - attn.astype(np.float32)) * -1e9).reshape(B, 1, S_pad)

    # --- embedding sum (host-side XLA gathers; layernorm is in the kernel) ---
    emb = (params["word_emb"][ids]
           + params["pos_emb"][:S_pad][None, :, :]
           + params["type_emb"][tt])
    embln = jnp.stack([params["emb_ln_g"], params["emb_ln_b"]])   # (2, H)

    # --- one-hot 'first' pooling matrix (mask folded in, bf16 = exact for 0/1);
    #     rows beyond the real words stay zero, matching new_zeros outputs ---
    cum = np.zeros((B, L + 1), dtype=np.int64)
    cum[:, 1:] = np.cumsum(bwpl, axis=-1)
    Lp = max(8, ((L + 7) // 8) * 8)
    onehot = np.zeros((B, Lp, S_pad), dtype=np.float32)
    for b in range(B):
        for j in range(L):
            if word_mask[b, j]:
                # truncate_output_layer = output_layer[:, 1:-1] -> offset +1
                onehot[b, j, int(cum[b, j]) + 1] = 1.0

    pooled = fused_bert_encode(emb, jnp.asarray(amask, jnp.float32), embln,
                               params, jnp.asarray(onehot, jnp.bfloat16))
    outputs = pooled[:, :, :L, :]                  # (len(LAYERS), B, L, H)
    # TODO(synk): pooled_cls / include_cls_sep / 'avg' / 'max' branches of the
    # reference are not exercised by this configuration and are not implemented.
    return outputs


# ------------------------------------ main ------------------------------------
if __name__ == "__main__":
    key = jax.random.PRNGKey(0)
    k_words, k_params = jax.random.split(key)

    B, L = 2, 6
    words = jax.random.randint(k_words, (B, L), 2, WORD_VOCAB, dtype=jnp.int32)
    # variable-length sentences: pad tails with the word-level padding index
    words = words.at[0, 4:].set(WORD_PAD_IDX)
    words = words.at[1, 5:].set(WORD_PAD_IDX)
    words_np = np.asarray(words)

    word_to_wordpieces, word_pieces_lengths = build_synthetic_vocab(0)
    params = init_params(k_params)

    out = bert_word_model_forward(words_np, params, word_to_wordpieces,
                                  word_pieces_lengths)
    out = jax.block_until_ready(out)
    assert out.shape == (len(LAYERS), B, L, HIDDEN), out.shape
    assert bool(jnp.all(jnp.isfinite(out)))
    print("KERNEL_OK")
</pallas_src>

<mosaic_0001>
module attributes {stable_mosaic.version = 11 : i64} {
  func.func @fused_bert_kernel(%arg0: i32, %arg1: memref<1x16x128xf32, #tpu.memory_space<vmem>>, %arg2: memref<1x1x16xf32, #tpu.memory_space<vmem>>, %arg3: memref<2x128xf32, #tpu.memory_space<vmem>>, %arg4: memref<2x128x256xbf16, #tpu.memory_space<vmem>>, %arg5: memref<2x128x256xbf16, #tpu.memory_space<vmem>>, %arg6: memref<2x128x256xbf16, #tpu.memory_space<vmem>>, %arg7: memref<2x1x256xf32, #tpu.memory_space<vmem>>, %arg8: memref<2x256x128xbf16, #tpu.memory_space<vmem>>, %arg9: memref<2x6x128xf32, #tpu.memory_space<vmem>>, %arg10: memref<1x8x16xbf16, #tpu.memory_space<vmem>>, %arg11: memref<1x1x8x128xf32, #tpu.memory_space<vmem>>) attributes {dimension_semantics = [#tpu.dimension_semantics<parallel>], iteration_bounds = array<i64: 2>, scalar_prefetch = 0 : i64, scratch_operands = 0 : i64, tpu.core_type = #tpu.core_type<tc>, window_params = [{transform_indices = @transform_0, window_bounds = array<i64: 1, 16, 128>}, {transform_indices = @transform_1, window_bounds = array<i64: 1, 1, 16>}, {pipeline_mode = #tpu.pipeline_mode<synchronous>, transform_indices = @transform_2, window_bounds = array<i64: 2, 128>}, {pipeline_mode = #tpu.pipeline_mode<synchronous>, transform_indices = @transform_3, window_bounds = array<i64: 2, 128, 256>}, {pipeline_mode = #tpu.pipeline_mode<synchronous>, transform_indices = @transform_4, window_bounds = array<i64: 2, 128, 256>}, {pipeline_mode = #tpu.pipeline_mode<synchronous>, transform_indices = @transform_5, window_bounds = array<i64: 2, 128, 256>}, {pipeline_mode = #tpu.pipeline_mode<synchronous>, transform_indices = @transform_6, window_bounds = array<i64: 2, 1, 256>}, {pipeline_mode = #tpu.pipeline_mode<synchronous>, transform_indices = @transform_7, window_bounds = array<i64: 2, 256, 128>}, {pipeline_mode = #tpu.pipeline_mode<synchronous>, transform_indices = @transform_8, window_bounds = array<i64: 2, 6, 128>}, {transform_indices = @transform_9, window_bounds = array<i64: 1, 8, 16>}, {transform_indices = @transform_10, window_bounds = array<i64: 1, 1, 8, 128>}]} {
    %c0 = arith.constant 0 : index
    %c0_0 = arith.constant 0 : index
    %0 = vector.load %arg3[%c0, %c0_0] : memref<2x128xf32, #tpu.memory_space<vmem>>, vector<2x128xf32>
    %c0_1 = arith.constant 0 : index
    %c0_2 = arith.constant 0 : index
    %c0_3 = arith.constant 0 : index
    %1 = vector.load %arg1[%c0_1, %c0_2, %c0_3] : memref<1x16x128xf32, #tpu.memory_space<vmem>>, vector<1x16x128xf32>
    %2 = vector.shape_cast %1 : vector<1x16x128xf32> to vector<16x128xf32>
    %3 = vector.extract_strided_slice %0 {offsets = [0, 0], sizes = [1, 128], strides = [1, 1]} : vector<2x128xf32> to vector<1x128xf32>
    %4 = vector.extract_strided_slice %0 {offsets = [1, 0], sizes = [1, 128], strides = [1, 1]} : vector<2x128xf32> to vector<1x128xf32>
    %cst = arith.constant dense<0.000000e+00> : vector<16xf32>
    %5 = vector.multi_reduction <add>, %2, %cst [1] : vector<16x128xf32> to vector<16xf32>
    %6 = vector.shape_cast %5 : vector<16xf32> to vector<16x1xf32>
    %cst_4 = arith.constant 1.280000e+02 : f32
    %7 = vector.broadcast %cst_4 : f32 to vector<16x1xf32>
    %8 = arith.divf %6, %7 : vector<16x1xf32>
    %9 = vector.broadcast %8 : vector<16x1xf32> to vector<16x128xf32>
    %10 = arith.subf %2, %9 : vector<16x128xf32>
    %11 = arith.mulf %10, %10 : vector<16x128xf32>
    %cst_5 = arith.constant dense<0.000000e+00> : vector<16xf32>
    %12 = vector.multi_reduction <add>, %11, %cst_5 [1] : vector<16x128xf32> to vector<16xf32>
    %13 = vector.shape_cast %12 : vector<16xf32> to vector<16x1xf32>
    %cst_6 = arith.constant 1.280000e+02 : f32
    %14 = vector.broadcast %cst_6 : f32 to vector<16x1xf32>
    %15 = arith.divf %13, %14 : vector<16x1xf32>
    %16 = vector.broadcast %8 : vector<16x1xf32> to vector<16x128xf32>
    %17 = arith.subf %2, %16 : vector<16x128xf32>
    %cst_7 = arith.constant 9.99999996E-13 : f32
    %18 = vector.broadcast %cst_7 : f32 to vector<16x1xf32>
    %19 = arith.addf %15, %18 : vector<16x1xf32>
    %20 = math.rsqrt %19 : vector<16x1xf32>
    %21 = vector.broadcast %20 : vector<16x1xf32> to vector<16x128xf32>
    %22 = arith.mulf %17, %21 : vector<16x128xf32>
    %23 = vector.broadcast %3 : vector<1x128xf32> to vector<16x128xf32>
    %24 = arith.mulf %22, %23 : vector<16x128xf32>
    %25 = vector.broadcast %4 : vector<1x128xf32> to vector<16x128xf32>
    %26 = arith.addf %24, %25 : vector<16x128xf32>
    %c0_8 = arith.constant 0 : index
    %c0_9 = arith.constant 0 : index
    %c0_10 = arith.constant 0 : index
    %27 = vector.load %arg2[%c0_8, %c0_9, %c0_10] : memref<1x1x16xf32, #tpu.memory_space<vmem>>, vector<1x1x16xf32>
    %28 = vector.shape_cast %27 : vector<1x1x16xf32> to vector<1x16xf32>
    %29 = vector.shape_cast %28 : vector<1x16xf32> to vector<1x16xf32>
    %30 = vector.broadcast %29 : vector<1x16xf32> to vector<16x16xf32>
    %c0_11 = arith.constant 0 : index
    %c0_12 = arith.constant 0 : index
    %c0_13 = arith.constant 0 : index
    %31 = vector.load %arg10[%c0_11, %c0_12, %c0_13] : memref<1x8x16xbf16, #tpu.memory_space<vmem>>, vector<1x8x16xbf16>
    %32 = vector.shape_cast %31 : vector<1x8x16xbf16> to vector<8x16xbf16>
    %c0_14 = arith.constant 0 : index
    %c0_15 = arith.constant 0 : index
    %c0_16 = arith.constant 0 : index
    %33 = vector.load %arg9[%c0_14, %c0_15, %c0_16] : memref<2x6x128xf32, #tpu.memory_space<vmem>>, vector<1x6x128xf32>
    %34 = vector.shape_cast %33 : vector<1x6x128xf32> to vector<6x128xf32>
    %35 = vector.extract_strided_slice %34 {offsets = [0, 0], sizes = [1, 128], strides = [1, 1]} : vector<6x128xf32> to vector<1x128xf32>
    %36 = vector.extract_strided_slice %34 {offsets = [1, 0], sizes = [1, 128], strides = [1, 1]} : vector<6x128xf32> to vector<1x128xf32>
    %37 = vector.extract_strided_slice %34 {offsets = [2, 0], sizes = [1, 128], strides = [1, 1]} : vector<6x128xf32> to vector<1x128xf32>
    %38 = vector.extract_strided_slice %34 {offsets = [3, 0], sizes = [1, 128], strides = [1, 1]} : vector<6x128xf32> to vector<1x128xf32>
    %39 = vector.extract_strided_slice %34 {offsets = [4, 0], sizes = [1, 128], strides = [1, 1]} : vector<6x128xf32> to vector<1x128xf32>
    %40 = vector.extract_strided_slice %34 {offsets = [5, 0], sizes = [1, 128], strides = [1, 1]} : vector<6x128xf32> to vector<1x128xf32>
    %41 = arith.truncf %26 : vector<16x128xf32> to vector<16x128xbf16>
    %c0_17 = arith.constant 0 : index
    %c0_18 = arith.constant 0 : index
    %c0_19 = arith.constant 0 : index
    %42 = vector.load %arg4[%c0_17, %c0_18, %c0_19] : memref<2x128x256xbf16, #tpu.memory_space<vmem>>, vector<1x128x256xbf16>
    %43 = vector.shape_cast %42 : vector<1x128x256xbf16> to vector<128x256xbf16>
    %cst_20 = arith.constant dense<0.000000e+00> : vector<16x256xf32>
    %44 = tpu.matmul %41, %43, %cst_20 {dimension_numbers = #tpu.dot_dimension_numbers<[1], [0], [0], [1], [0, 0, 1, 1], [], []>} : vector<16x128xbf16>, vector<128x256xbf16>, vector<16x256xf32> -> vector<16x256xf32>
    %45 = arith.truncf %44 : vector<16x256xf32> to vector<16x256xbf16>
    %c0_21 = arith.constant 0 : index
    %c0_22 = arith.constant 0 : index
    %c0_23 = arith.constant 0 : index
    %46 = vector.load %arg5[%c0_21, %c0_22, %c0_23] : memref<2x128x256xbf16, #tpu.memory_space<vmem>>, vector<1x128x256xbf16>
    %47 = vector.shape_cast %46 : vector<1x128x256xbf16> to vector<128x256xbf16>
    %cst_24 = arith.constant dense<0.000000e+00> : vector<16x256xf32>
    %48 = tpu.matmul %41, %47, %cst_24 {dimension_numbers = #tpu.dot_dimension_numbers<[1], [0], [0], [1], [0, 0, 1, 1], [], []>} : vector<16x128xbf16>, vector<128x256xbf16>, vector<16x256xf32> -> vector<16x256xf32>
    %49 = arith.truncf %48 : vector<16x256xf32> to vector<16x256xbf16>
    %50 = vector.extract_strided_slice %45 {offsets = [0, 0], sizes = [16, 128], strides = [1, 1]} : vector<16x256xbf16> to vector<16x128xbf16>
    %cst_25 = arith.constant dense<0.000000e+00> : vector<16x16xf32>
    %51 = tpu.matmul %50, %41, %cst_25 {dimension_numbers = #tpu.dot_dimension_numbers<[1], [1], [0], [0], [0, 0, 1, 0], [], []>} : vector<16x128xbf16>, vector<16x128xbf16>, vector<16x16xf32> -> vector<16x16xf32>
    %52 = arith.addf %51, %30 : vector<16x16xf32>
    %cst_26 = arith.constant dense<0xFF800000> : vector<16xf32>
    %53 = vector.multi_reduction <maximumf>, %52, %cst_26 [1] : vector<16x16xf32> to vector<16xf32>
    %54 = vector.shape_cast %53 : vector<16xf32> to vector<16x1xf32>
    %55 = vector.broadcast %54 : vector<16x1xf32> to vector<16x16xf32>
    %56 = arith.subf %52, %55 : vector<16x16xf32>
    %57 = math.exp %56 : vector<16x16xf32>
    %cst_27 = arith.constant dense<0.000000e+00> : vector<16xf32>
    %58 = vector.multi_reduction <add>, %57, %cst_27 [1] : vector<16x16xf32> to vector<16xf32>
    %59 = vector.shape_cast %58 : vector<16xf32> to vector<16x1xf32>
    %60 = tpu.reciprocal %59 {approx = true} : vector<16x1xf32> -> vector<16x1xf32>
    %61 = vector.broadcast %60 : vector<16x1xf32> to vector<16x16xf32>
    %62 = arith.mulf %57, %61 : vector<16x16xf32>
    %63 = arith.truncf %62 : vector<16x16xf32> to vector<16x16xbf16>
    %64 = vector.extract_strided_slice %49 {offsets = [0, 0], sizes = [16, 128], strides = [1, 1]} : vector<16x256xbf16> to vector<16x128xbf16>
    %cst_28 = arith.constant dense<0.000000e+00> : vector<16x128xf32>
    %65 = tpu.matmul %63, %64, %cst_28 {dimension_numbers = #tpu.dot_dimension_numbers<[1], [0], [0], [1], [0, 0, 1, 1], [], []>} : vector<16x16xbf16>, vector<16x128xbf16>, vector<16x128xf32> -> vector<16x128xf32>
    %66 = vector.extract_strided_slice %45 {offsets = [0, 128], sizes = [16, 128], strides = [1, 1]} : vector<16x256xbf16> to vector<16x128xbf16>
    %cst_29 = arith.constant dense<0.000000e+00> : vector<16x16xf32>
    %67 = tpu.matmul %66, %41, %cst_29 {dimension_numbers = #tpu.dot_dimension_numbers<[1], [1], [0], [0], [0, 0, 1, 0], [], []>} : vector<16x128xbf16>, vector<16x128xbf16>, vector<16x16xf32> -> vector<16x16xf32>
    %68 = arith.addf %67, %30 : vector<16x16xf32>
    %cst_30 = arith.constant dense<0xFF800000> : vector<16xf32>
    %69 = vector.multi_reduction <maximumf>, %68, %cst_30 [1] : vector<16x16xf32> to vector<16xf32>
    %70 = vector.shape_cast %69 : vector<16xf32> to vector<16x1xf32>
    %71 = vector.broadcast %70 : vector<16x1xf32> to vector<16x16xf32>
    %72 = arith.subf %68, %71 : vector<16x16xf32>
    %73 = math.exp %72 : vector<16x16xf32>
    %cst_31 = arith.constant dense<0.000000e+00> : vector<16xf32>
    %74 = vector.multi_reduction <add>, %73, %cst_31 [1] : vector<16x16xf32> to vector<16xf32>
    %75 = vector.shape_cast %74 : vector<16xf32> to vector<16x1xf32>
    %76 = tpu.reciprocal %75 {approx = true} : vector<16x1xf32> -> vector<16x1xf32>
    %77 = vector.broadcast %76 : vector<16x1xf32> to vector<16x16xf32>
    %78 = arith.mulf %73, %77 : vector<16x16xf32>
    %79 = arith.truncf %78 : vector<16x16xf32> to vector<16x16xbf16>
    %80 = vector.extract_strided_slice %49 {offsets = [0, 128], sizes = [16, 128], strides = [1, 1]} : vector<16x256xbf16> to vector<16x128xbf16>
    %cst_32 = arith.constant dense<0.000000e+00> : vector<16x128xf32>
    %81 = tpu.matmul %79, %80, %cst_32 {dimension_numbers = #tpu.dot_dimension_numbers<[1], [0], [0], [1], [0, 0, 1, 1], [], []>} : vector<16x16xbf16>, vector<16x128xbf16>, vector<16x128xf32> -> vector<16x128xf32>
    %82 = arith.addf %65, %81 : vector<16x128xf32>
    %83 = arith.addf %26, %82 : vector<16x128xf32>
    %84 = vector.broadcast %35 : vector<1x128xf32> to vector<16x128xf32>
    %85 = arith.addf %83, %84 : vector<16x128xf32>
    %cst_33 = arith.constant dense<0.000000e+00> : vector<16xf32>
    %86 = vector.multi_reduction <add>, %85, %cst_33 [1] : vector<16x128xf32> to vector<16xf32>
    %87 = vector.shape_cast %86 : vector<16xf32> to vector<16x1xf32>
    %cst_34 = arith.constant 1.280000e+02 : f32
    %88 = vector.broadcast %cst_34 : f32 to vector<16x1xf32>
    %89 = arith.divf %87, %88 : vector<16x1xf32>
    %90 = vector.broadcast %89 : vector<16x1xf32> to vector<16x128xf32>
    %91 = arith.subf %85, %90 : vector<16x128xf32>
    %92 = arith.mulf %91, %91 : vector<16x128xf32>
    %cst_35 = arith.constant dense<0.000000e+00> : vector<16xf32>
    %93 = vector.multi_reduction <add>, %92, %cst_35 [1] : vector<16x128xf32> to vector<16xf32>
    %94 = vector.shape_cast %93 : vector<16xf32> to vector<16x1xf32>
    %cst_36 = arith.constant 1.280000e+02 : f32
    %95 = vector.broadcast %cst_36 : f32 to vector<16x1xf32>
    %96 = arith.divf %94, %95 : vector<16x1xf32>
    %97 = vector.broadcast %89 : vector<16x1xf32> to vector<16x128xf32>
    %98 = arith.subf %85, %97 : vector<16x128xf32>
    %cst_37 = arith.constant 9.99999996E-13 : f32
    %99 = vector.broadcast %cst_37 : f32 to vector<16x1xf32>
    %100 = arith.addf %96, %99 : vector<16x1xf32>
    %101 = math.rsqrt %100 : vector<16x1xf32>
    %102 = vector.broadcast %101 : vector<16x1xf32> to vector<16x128xf32>
    %103 = arith.mulf %98, %102 : vector<16x128xf32>
    %104 = vector.broadcast %36 : vector<1x128xf32> to vector<16x128xf32>
    %105 = arith.mulf %103, %104 : vector<16x128xf32>
    %106 = vector.broadcast %37 : vector<1x128xf32> to vector<16x128xf32>
    %107 = arith.addf %105, %106 : vector<16x128xf32>
    %108 = arith.truncf %107 : vector<16x128xf32> to vector<16x128xbf16>
    %c0_38 = arith.constant 0 : index
    %c0_39 = arith.constant 0 : index
    %c0_40 = arith.constant 0 : index
    %109 = vector.load %arg6[%c0_38, %c0_39, %c0_40] : memref<2x128x256xbf16, #tpu.memory_space<vmem>>, vector<1x128x256xbf16>
    %110 = vector.shape_cast %109 : vector<1x128x256xbf16> to vector<128x256xbf16>
    %cst_41 = arith.constant dense<0.000000e+00> : vector<16x256xf32>
    %111 = tpu.matmul %108, %110, %cst_41 {dimension_numbers = #tpu.dot_dimension_numbers<[1], [0], [0], [1], [0, 0, 1, 1], [], []>} : vector<16x128xbf16>, vector<128x256xbf16>, vector<16x256xf32> -> vector<16x256xf32>
    %c0_42 = arith.constant 0 : index
    %c0_43 = arith.constant 0 : index
    %c0_44 = arith.constant 0 : index
    %112 = vector.load %arg7[%c0_42, %c0_43, %c0_44] : memref<2x1x256xf32, #tpu.memory_space<vmem>>, vector<1x1x256xf32>
    %113 = vector.shape_cast %112 : vector<1x1x256xf32> to vector<1x256xf32>
    %114 = vector.broadcast %113 : vector<1x256xf32> to vector<16x256xf32>
    %115 = arith.addf %111, %114 : vector<16x256xf32>
    %cst_45 = arith.constant 5.000000e-01 : f32
    %116 = vector.broadcast %cst_45 : f32 to vector<16x256xf32>
    %117 = arith.mulf %116, %115 : vector<16x256xf32>
    %cst_46 = arith.constant 4.471500e-02 : f32
    %118 = vector.broadcast %cst_46 : f32 to vector<16x256xf32>
    %119 = arith.mulf %118, %115 : vector<16x256xf32>
    %120 = arith.mulf %119, %115 : vector<16x256xf32>
    %121 = arith.mulf %120, %115 : vector<16x256xf32>
    %122 = arith.addf %115, %121 : vector<16x256xf32>
    %cst_47 = arith.constant 0.797884583 : f32
    %123 = vector.broadcast %cst_47 : f32 to vector<16x256xf32>
    %124 = arith.mulf %123, %122 : vector<16x256xf32>
    %125 = math.tanh %124 : vector<16x256xf32>
    %cst_48 = arith.constant 1.000000e+00 : f32
    %126 = vector.broadcast %cst_48 : f32 to vector<16x256xf32>
    %127 = arith.addf %126, %125 : vector<16x256xf32>
    %128 = arith.mulf %117, %127 : vector<16x256xf32>
    %129 = arith.truncf %128 : vector<16x256xf32> to vector<16x256xbf16>
    %c0_49 = arith.constant 0 : index
    %c0_50 = arith.constant 0 : index
    %c0_51 = arith.constant 0 : index
    %130 = vector.load %arg8[%c0_49, %c0_50, %c0_51] : memref<2x256x128xbf16, #tpu.memory_space<vmem>>, vector<1x256x128xbf16>
    %131 = vector.shape_cast %130 : vector<1x256x128xbf16> to vector<256x128xbf16>
    %cst_52 = arith.constant dense<0.000000e+00> : vector<16x128xf32>
    %132 = tpu.matmul %129, %131, %cst_52 {dimension_numbers = #tpu.dot_dimension_numbers<[1], [0], [0], [1], [0, 0, 1, 1], [], []>} : vector<16x256xbf16>, vector<256x128xbf16>, vector<16x128xf32> -> vector<16x128xf32>
    %133 = vector.broadcast %38 : vector<1x128xf32> to vector<16x128xf32>
    %134 = arith.addf %132, %133 : vector<16x128xf32>
    %135 = arith.addf %107, %134 : vector<16x128xf32>
    %cst_53 = arith.constant dense<0.000000e+00> : vector<16xf32>
    %136 = vector.multi_reduction <add>, %135, %cst_53 [1] : vector<16x128xf32> to vector<16xf32>
    %137 = vector.shape_cast %136 : vector<16xf32> to vector<16x1xf32>
    %cst_54 = arith.constant 1.280000e+02 : f32
    %138 = vector.broadcast %cst_54 : f32 to vector<16x1xf32>
    %139 = arith.divf %137, %138 : vector<16x1xf32>
    %140 = vector.broadcast %139 : vector<16x1xf32> to vector<16x128xf32>
    %141 = arith.subf %135, %140 : vector<16x128xf32>
    %142 = arith.mulf %141, %141 : vector<16x128xf32>
    %cst_55 = arith.constant dense<0.000000e+00> : vector<16xf32>
    %143 = vector.multi_reduction <add>, %142, %cst_55 [1] : vector<16x128xf32> to vector<16xf32>
    %144 = vector.shape_cast %143 : vector<16xf32> to vector<16x1xf32>
    %cst_56 = arith.constant 1.280000e+02 : f32
    %145 = vector.broadcast %cst_56 : f32 to vector<16x1xf32>
    %146 = arith.divf %144, %145 : vector<16x1xf32>
    %147 = vector.broadcast %139 : vector<16x1xf32> to vector<16x128xf32>
    %148 = arith.subf %135, %147 : vector<16x128xf32>
    %cst_57 = arith.constant 9.99999996E-13 : f32
    %149 = vector.broadcast %cst_57 : f32 to vector<16x1xf32>
    %150 = arith.addf %146, %149 : vector<16x1xf32>
    %151 = math.rsqrt %150 : vector<16x1xf32>
    %152 = vector.broadcast %151 : vector<16x1xf32> to vector<16x128xf32>
    %153 = arith.mulf %148, %152 : vector<16x128xf32>
    %154 = vector.broadcast %39 : vector<1x128xf32> to vector<16x128xf32>
    %155 = arith.mulf %153, %154 : vector<16x128xf32>
    %156 = vector.broadcast %40 : vector<1x128xf32> to vector<16x128xf32>
    %157 = arith.addf %155, %156 : vector<16x128xf32>
    %c1 = arith.constant 1 : index
    %c0_58 = arith.constant 0 : index
    %c0_59 = arith.constant 0 : index
    %158 = vector.load %arg9[%c1, %c0_58, %c0_59] : memref<2x6x128xf32, #tpu.memory_space<vmem>>, vector<1x6x128xf32>
    %159 = vector.shape_cast %158 : vector<1x6x128xf32> to vector<6x128xf32>
    %160 = vector.extract_strided_slice %159 {offsets = [0, 0], sizes = [1, 128], strides = [1, 1]} : vector<6x128xf32> to vector<1x128xf32>
    %161 = vector.extract_strided_slice %159 {offsets = [1, 0], sizes = [1, 128], strides = [1, 1]} : vector<6x128xf32> to vector<1x128xf32>
    %162 = vector.extract_strided_slice %159 {offsets = [2, 0], sizes = [1, 128], strides = [1, 1]} : vector<6x128xf32> to vector<1x128xf32>
    %163 = vector.extract_strided_slice %159 {offsets = [3, 0], sizes = [1, 128], strides = [1, 1]} : vector<6x128xf32> to vector<1x128xf32>
    %164 = vector.extract_strided_slice %159 {offsets = [4, 0], sizes = [1, 128], strides = [1, 1]} : vector<6x128xf32> to vector<1x128xf32>
    %165 = vector.extract_strided_slice %159 {offsets = [5, 0], sizes = [1, 128], strides = [1, 1]} : vector<6x128xf32> to vector<1x128xf32>
    %166 = arith.truncf %157 : vector<16x128xf32> to vector<16x128xbf16>
    %c1_60 = arith.constant 1 : index
    %c0_61 = arith.constant 0 : index
    %c0_62 = arith.constant 0 : index
    %167 = vector.load %arg4[%c1_60, %c0_61, %c0_62] : memref<2x128x256xbf16, #tpu.memory_space<vmem>>, vector<1x128x256xbf16>
    %168 = vector.shape_cast %167 : vector<1x128x256xbf16> to vector<128x256xbf16>
    %cst_63 = arith.constant dense<0.000000e+00> : vector<16x256xf32>
    %169 = tpu.matmul %166, %168, %cst_63 {dimension_numbers = #tpu.dot_dimension_numbers<[1], [0], [0], [1], [0, 0, 1, 1], [], []>} : vector<16x128xbf16>, vector<128x256xbf16>, vector<16x256xf32> -> vector<16x256xf32>
    %170 = arith.truncf %169 : vector<16x256xf32> to vector<16x256xbf16>
    %c1_64 = arith.constant 1 : index
    %c0_65 = arith.constant 0 : index
    %c0_66 = arith.constant 0 : index
    %171 = vector.load %arg5[%c1_64, %c0_65, %c0_66] : memref<2x128x256xbf16, #tpu.memory_space<vmem>>, vector<1x128x256xbf16>
    %172 = vector.shape_cast %171 : vector<1x128x256xbf16> to vector<128x256xbf16>
    %cst_67 = arith.constant dense<0.000000e+00> : vector<16x256xf32>
    %173 = tpu.matmul %166, %172, %cst_67 {dimension_numbers = #tpu.dot_dimension_numbers<[1], [0], [0], [1], [0, 0, 1, 1], [], []>} : vector<16x128xbf16>, vector<128x256xbf16>, vector<16x256xf32> -> vector<16x256xf32>
    %174 = arith.truncf %173 : vector<16x256xf32> to vector<16x256xbf16>
    %175 = vector.extract_strided_slice %170 {offsets = [0, 0], sizes = [16, 128], strides = [1, 1]} : vector<16x256xbf16> to vector<16x128xbf16>
    %cst_68 = arith.constant dense<0.000000e+00> : vector<16x16xf32>
    %176 = tpu.matmul %175, %166, %cst_68 {dimension_numbers = #tpu.dot_dimension_numbers<[1], [1], [0], [0], [0, 0, 1, 0], [], []>} : vector<16x128xbf16>, vector<16x128xbf16>, vector<16x16xf32> -> vector<16x16xf32>
    %177 = arith.addf %176, %30 : vector<16x16xf32>
    %cst_69 = arith.constant dense<0xFF800000> : vector<16xf32>
    %178 = vector.multi_reduction <maximumf>, %177, %cst_69 [1] : vector<16x16xf32> to vector<16xf32>
    %179 = vector.shape_cast %178 : vector<16xf32> to vector<16x1xf32>
    %180 = vector.broadcast %179 : vector<16x1xf32> to vector<16x16xf32>
    %181 = arith.subf %177, %180 : vector<16x16xf32>
    %182 = math.exp %181 : vector<16x16xf32>
    %cst_70 = arith.constant dense<0.000000e+00> : vector<16xf32>
    %183 = vector.multi_reduction <add>, %182, %cst_70 [1] : vector<16x16xf32> to vector<16xf32>
    %184 = vector.shape_cast %183 : vector<16xf32> to vector<16x1xf32>
    %185 = tpu.reciprocal %184 {approx = true} : vector<16x1xf32> -> vector<16x1xf32>
    %186 = vector.broadcast %185 : vector<16x1xf32> to vector<16x16xf32>
    %187 = arith.mulf %182, %186 : vector<16x16xf32>
    %188 = arith.truncf %187 : vector<16x16xf32> to vector<16x16xbf16>
    %189 = vector.extract_strided_slice %174 {offsets = [0, 0], sizes = [16, 128], strides = [1, 1]} : vector<16x256xbf16> to vector<16x128xbf16>
    %cst_71 = arith.constant dense<0.000000e+00> : vector<16x128xf32>
    %190 = tpu.matmul %188, %189, %cst_71 {dimension_numbers = #tpu.dot_dimension_numbers<[1], [0], [0], [1], [0, 0, 1, 1], [], []>} : vector<16x16xbf16>, vector<16x128xbf16>, vector<16x128xf32> -> vector<16x128xf32>
    %191 = vector.extract_strided_slice %170 {offsets = [0, 128], sizes = [16, 128], strides = [1, 1]} : vector<16x256xbf16> to vector<16x128xbf16>
    %cst_72 = arith.constant dense<0.000000e+00> : vector<16x16xf32>
    %192 = tpu.matmul %191, %166, %cst_72 {dimension_numbers = #tpu.dot_dimension_numbers<[1], [1], [0], [0], [0, 0, 1, 0], [], []>} : vector<16x128xbf16>, vector<16x128xbf16>, vector<16x16xf32> -> vector<16x16xf32>
    %193 = arith.addf %192, %30 : vector<16x16xf32>
    %cst_73 = arith.constant dense<0xFF800000> : vector<16xf32>
    %194 = vector.multi_reduction <maximumf>, %193, %cst_73 [1] : vector<16x16xf32> to vector<16xf32>
    %195 = vector.shape_cast %194 : vector<16xf32> to vector<16x1xf32>
    %196 = vector.broadcast %195 : vector<16x1xf32> to vector<16x16xf32>
    %197 = arith.subf %193, %196 : vector<16x16xf32>
    %198 = math.exp %197 : vector<16x16xf32>
    %cst_74 = arith.constant dense<0.000000e+00> : vector<16xf32>
    %199 = vector.multi_reduction <add>, %198, %cst_74 [1] : vector<16x16xf32> to vector<16xf32>
    %200 = vector.shape_cast %199 : vector<16xf32> to vector<16x1xf32>
    %201 = tpu.reciprocal %200 {approx = true} : vector<16x1xf32> -> vector<16x1xf32>
    %202 = vector.broadcast %201 : vector<16x1xf32> to vector<16x16xf32>
    %203 = arith.mulf %198, %202 : vector<16x16xf32>
    %204 = arith.truncf %203 : vector<16x16xf32> to vector<16x16xbf16>
    %205 = vector.extract_strided_slice %174 {offsets = [0, 128], sizes = [16, 128], strides = [1, 1]} : vector<16x256xbf16> to vector<16x128xbf16>
    %cst_75 = arith.constant dense<0.000000e+00> : vector<16x128xf32>
    %206 = tpu.matmul %204, %205, %cst_75 {dimension_numbers = #tpu.dot_dimension_numbers<[1], [0], [0], [1], [0, 0, 1, 1], [], []>} : vector<16x16xbf16>, vector<16x128xbf16>, vector<16x128xf32> -> vector<16x128xf32>
    %207 = arith.addf %190, %206 : vector<16x128xf32>
    %208 = arith.addf %157, %207 : vector<16x128xf32>
    %209 = vector.broadcast %160 : vector<1x128xf32> to vector<16x128xf32>
    %210 = arith.addf %208, %209 : vector<16x128xf32>
    %cst_76 = arith.constant dense<0.000000e+00> : vector<16xf32>
    %211 = vector.multi_reduction <add>, %210, %cst_76 [1] : vector<16x128xf32> to vector<16xf32>
    %212 = vector.shape_cast %211 : vector<16xf32> to vector<16x1xf32>
    %cst_77 = arith.constant 1.280000e+02 : f32
    %213 = vector.broadcast %cst_77 : f32 to vector<16x1xf32>
    %214 = arith.divf %212, %213 : vector<16x1xf32>
    %215 = vector.broadcast %214 : vector<16x1xf32> to vector<16x128xf32>
    %216 = arith.subf %210, %215 : vector<16x128xf32>
    %217 = arith.mulf %216, %216 : vector<16x128xf32>
    %cst_78 = arith.constant dense<0.000000e+00> : vector<16xf32>
    %218 = vector.multi_reduction <add>, %217, %cst_78 [1] : vector<16x128xf32> to vector<16xf32>
    %219 = vector.shape_cast %218 : vector<16xf32> to vector<16x1xf32>
    %cst_79 = arith.constant 1.280000e+02 : f32
    %220 = vector.broadcast %cst_79 : f32 to vector<16x1xf32>
    %221 = arith.divf %219, %220 : vector<16x1xf32>
    %222 = vector.broadcast %214 : vector<16x1xf32> to vector<16x128xf32>
    %223 = arith.subf %210, %222 : vector<16x128xf32>
    %cst_80 = arith.constant 9.99999996E-13 : f32
    %224 = vector.broadcast %cst_80 : f32 to vector<16x1xf32>
    %225 = arith.addf %221, %224 : vector<16x1xf32>
    %226 = math.rsqrt %225 : vector<16x1xf32>
    %227 = vector.broadcast %226 : vector<16x1xf32> to vector<16x128xf32>
    %228 = arith.mulf %223, %227 : vector<16x128xf32>
    %229 = vector.broadcast %161 : vector<1x128xf32> to vector<16x128xf32>
    %230 = arith.mulf %228, %229 : vector<16x128xf32>
    %231 = vector.broadcast %162 : vector<1x128xf32> to vector<16x128xf32>
    %232 = arith.addf %230, %231 : vector<16x128xf32>
    %233 = arith.truncf %232 : vector<16x128xf32> to vector<16x128xbf16>
    %c1_81 = arith.constant 1 : index
    %c0_82 = arith.constant 0 : index
    %c0_83 = arith.constant 0 : index
    %234 = vector.load %arg6[%c1_81, %c0_82, %c0_83] : memref<2x128x256xbf16, #tpu.memory_space<vmem>>, vector<1x128x256xbf16>
    %235 = vector.shape_cast %234 : vector<1x128x256xbf16> to vector<128x256xbf16>
    %cst_84 = arith.constant dense<0.000000e+00> : vector<16x256xf32>
    %236 = tpu.matmul %233, %235, %cst_84 {dimension_numbers = #tpu.dot_dimension_numbers<[1], [0], [0], [1], [0, 0, 1, 1], [], []>} : vector<16x128xbf16>, vector<128x256xbf16>, vector<16x256xf32> -> vector<16x256xf32>
    %c1_85 = arith.constant 1 : index
    %c0_86 = arith.constant 0 : index
    %c0_87 = arith.constant 0 : index
    %237 = vector.load %arg7[%c1_85, %c0_86, %c0_87] : memref<2x1x256xf32, #tpu.memory_space<vmem>>, vector<1x1x256xf32>
    %238 = vector.shape_cast %237 : vector<1x1x256xf32> to vector<1x256xf32>
    %239 = vector.broadcast %238 : vector<1x256xf32> to vector<16x256xf32>
    %240 = arith.addf %236, %239 : vector<16x256xf32>
    %cst_88 = arith.constant 5.000000e-01 : f32
    %241 = vector.broadcast %cst_88 : f32 to vector<16x256xf32>
    %242 = arith.mulf %241, %240 : vector<16x256xf32>
    %cst_89 = arith.constant 4.471500e-02 : f32
    %243 = vector.broadcast %cst_89 : f32 to vector<16x256xf32>
    %244 = arith.mulf %243, %240 : vector<16x256xf32>
    %245 = arith.mulf %244, %240 : vector<16x256xf32>
    %246 = arith.mulf %245, %240 : vector<16x256xf32>
    %247 = arith.addf %240, %246 : vector<16x256xf32>
    %cst_90 = arith.constant 0.797884583 : f32
    %248 = vector.broadcast %cst_90 : f32 to vector<16x256xf32>
    %249 = arith.mulf %248, %247 : vector<16x256xf32>
    %250 = math.tanh %249 : vector<16x256xf32>
    %cst_91 = arith.constant 1.000000e+00 : f32
    %251 = vector.broadcast %cst_91 : f32 to vector<16x256xf32>
    %252 = arith.addf %251, %250 : vector<16x256xf32>
    %253 = arith.mulf %242, %252 : vector<16x256xf32>
    %254 = arith.truncf %253 : vector<16x256xf32> to vector<16x256xbf16>
    %c1_92 = arith.constant 1 : index
    %c0_93 = arith.constant 0 : index
    %c0_94 = arith.constant 0 : index
    %255 = vector.load %arg8[%c1_92, %c0_93, %c0_94] : memref<2x256x128xbf16, #tpu.memory_space<vmem>>, vector<1x256x128xbf16>
    %256 = vector.shape_cast %255 : vector<1x256x128xbf16> to vector<256x128xbf16>
    %cst_95 = arith.constant dense<0.000000e+00> : vector<16x128xf32>
    %257 = tpu.matmul %254, %256, %cst_95 {dimension_numbers = #tpu.dot_dimension_numbers<[1], [0], [0], [1], [0, 0, 1, 1], [], []>} : vector<16x256xbf16>, vector<256x128xbf16>, vector<16x128xf32> -> vector<16x128xf32>
    %258 = vector.broadcast %163 : vector<1x128xf32> to vector<16x128xf32>
    %259 = arith.addf %257, %258 : vector<16x128xf32>
    %260 = arith.addf %232, %259 : vector<16x128xf32>
    %cst_96 = arith.constant dense<0.000000e+00> : vector<16xf32>
    %261 = vector.multi_reduction <add>, %260, %cst_96 [1] : vector<16x128xf32> to vector<16xf32>
    %262 = vector.shape_cast %261 : vector<16xf32> to vector<16x1xf32>
    %cst_97 = arith.constant 1.280000e+02 : f32
    %263 = vector.broadcast %cst_97 : f32 to vector<16x1xf32>
    %264 = arith.divf %262, %263 : vector<16x1xf32>
    %265 = vector.broadcast %264 : vector<16x1xf32> to vector<16x128xf32>
    %266 = arith.subf %260, %265 : vector<16x128xf32>
    %267 = arith.mulf %266, %266 : vector<16x128xf32>
    %cst_98 = arith.constant dense<0.000000e+00> : vector<16xf32>
    %268 = vector.multi_reduction <add>, %267, %cst_98 [1] : vector<16x128xf32> to vector<16xf32>
    %269 = vector.shape_cast %268 : vector<16xf32> to vector<16x1xf32>
    %cst_99 = arith.constant 1.280000e+02 : f32
    %270 = vector.broadcast %cst_99 : f32 to vector<16x1xf32>
    %271 = arith.divf %269, %270 : vector<16x1xf32>
    %272 = vector.broadcast %264 : vector<16x1xf32> to vector<16x128xf32>
    %273 = arith.subf %260, %272 : vector<16x128xf32>
    %cst_100 = arith.constant 9.99999996E-13 : f32
    %274 = vector.broadcast %cst_100 : f32 to vector<16x1xf32>
    %275 = arith.addf %271, %274 : vector<16x1xf32>
    %276 = math.rsqrt %275 : vector<16x1xf32>
    %277 = vector.broadcast %276 : vector<16x1xf32> to vector<16x128xf32>
    %278 = arith.mulf %273, %277 : vector<16x128xf32>
    %279 = vector.broadcast %164 : vector<1x128xf32> to vector<16x128xf32>
    %280 = arith.mulf %278, %279 : vector<16x128xf32>
    %281 = vector.broadcast %165 : vector<1x128xf32> to vector<16x128xf32>
    %282 = arith.addf %280, %281 : vector<16x128xf32>
    %283 = arith.truncf %282 : vector<16x128xf32> to vector<16x128xbf16>
    %cst_101 = arith.constant dense<0.000000e+00> : vector<8x128xf32>
    %284 = tpu.matmul %32, %283, %cst_101 {dimension_numbers = #tpu.dot_dimension_numbers<[1], [0], [0], [1], [0, 0, 1, 1], [], []>} : vector<8x16xbf16>, vector<16x128xbf16>, vector<8x128xf32> -> vector<8x128xf32>
    %c0_102 = arith.constant 0 : index
    %c0_103 = arith.constant 0 : index
    %c0_104 = arith.constant 0 : index
    %c0_105 = arith.constant 0 : index
    %285 = vector.load %arg11[%c0_102, %c0_103, %c0_104, %c0_105] : memref<1x1x8x128xf32, #tpu.memory_space<vmem>>, vector<1x1x8x128xf32>
    %286 = vector.shape_cast %285 : vector<1x1x8x128xf32> to vector<8x128xf32>
    %287 = vector.shape_cast %284 : vector<8x128xf32> to vector<1x1x8x128xf32>
    tpu.vector_store %arg11[%c0_102, %c0_103, %c0_104, %c0_105], %287 {strides = array<i32>} : memref<1x1x8x128xf32, #tpu.memory_space<vmem>>, vector<1x1x8x128xf32>,
    return
  }
  func.func @transform_0(%arg0: i32) -> (i32, i32, i32) {
    %c0_i32 = arith.constant 0 : i32
    %c0_i32_0 = arith.constant 0 : i32
    %c0_i32_1 = arith.constant 0 : i32
    return %arg0, %c0_i32, %c0_i32_0 : i32, i32, i32
  }
  func.func @transform_1(%arg0: i32) -> (i32, i32, i32) {
    %c0_i32 = arith.constant 0 : i32
    %c0_i32_0 = arith.constant 0 : i32
    %c0_i32_1 = arith.constant 0 : i32
    return %arg0, %c0_i32, %c0_i32_0 : i32, i32, i32
  }
  func.func @transform_2(%arg0: i32) -> (i32, i32) {
    %c0_i32 = arith.constant 0 : i32
    %c0_i32_0 = arith.constant 0 : i32
    %c0_i32_1 = arith.constant 0 : i32
    return %c0_i32, %c0_i32_0 : i32, i32
  }
  func.func @transform_3(%arg0: i32) -> (i32, i32, i32) {
    %c0_i32 = arith.constant 0 : i32
    %c0_i32_0 = arith.constant 0 : i32
    %c0_i32_1 = arith.constant 0 : i32
    %c0_i32_2 = arith.constant 0 : i32
    return %c0_i32, %c0_i32_0, %c0_i32_1 : i32, i32, i32
  }
  func.func @transform_4(%arg0: i32) -> (i32, i32, i32) {
    %c0_i32 = arith.constant 0 : i32
    %c0_i32_0 = arith.constant 0 : i32
    %c0_i32_1 = arith.constant 0 : i32
    %c0_i32_2 = arith.constant 0 : i32
    return %c0_i32, %c0_i32_0, %c0_i32_1 : i32, i32, i32
  }
  func.func @transform_5(%arg0: i32) -> (i32, i32, i32) {
    %c0_i32 = arith.constant 0 : i32
    %c0_i32_0 = arith.constant 0 : i32
    %c0_i32_1 = arith.constant 0 : i32
    %c0_i32_2 = arith.constant 0 : i32
    return %c0_i32, %c0_i32_0, %c0_i32_1 : i32, i32, i32
  }
  func.func @transform_6(%arg0: i32) -> (i32, i32, i32) {
    %c0_i32 = arith.constant 0 : i32
    %c0_i32_0 = arith.constant 0 : i32
    %c0_i32_1 = arith.constant 0 : i32
    %c0_i32_2 = arith.constant 0 : i32
    return %c0_i32, %c0_i32_0, %c0_i32_1 : i32, i32, i32
  }
  func.func @transform_7(%arg0: i32) -> (i32, i32, i32) {
    %c0_i32 = arith.constant 0 : i32
    %c0_i32_0 = arith.constant 0 : i32
    %c0_i32_1 = arith.constant 0 : i32
    %c0_i32_2 = arith.constant 0 : i32
    return %c0_i32, %c0_i32_0, %c0_i32_1 : i32, i32, i32
  }
  func.func @transform_8(%arg0: i32) -> (i32, i32, i32) {
    %c0_i32 = arith.constant 0 : i32
    %c0_i32_0 = arith.constant 0 : i32
    %c0_i32_1 = arith.constant 0 : i32
    %c0_i32_2 = arith.constant 0 : i32
    return %c0_i32, %c0_i32_0, %c0_i32_1 : i32, i32, i32
  }
  func.func @transform_9(%arg0: i32) -> (i32, i32, i32) {
    %c0_i32 = arith.constant 0 : i32
    %c0_i32_0 = arith.constant 0 : i32
    %c0_i32_1 = arith.constant 0 : i32
    return %arg0, %c0_i32, %c0_i32_0 : i32, i32, i32
  }
  func.func @transform_10(%arg0: i32) -> (i32, i32, i32, i32) {
    %c0_i32 = arith.constant 0 : i32
    %c0_i32_0 = arith.constant 0 : i32
    %c0_i32_1 = arith.constant 0 : i32
    %c0_i32_2 = arith.constant 0 : i32
    return %c0_i32, %arg0, %c0_i32_0, %c0_i32_1 : i32, i32, i32, i32
  }
}

</mosaic_0001>

<bundles_post_ra>
// kernel: tpu_custom_call.1
= control target key start
LH: loop header
LB: loop body
LE: loop exit
PB: predicated region body
PF: predicated region fallthrough
CT: control target
= control target key end

     0   :  { %s3965_s0 = inlined_call_operand.hbm [shape: f32[2,16,128], index: 0, kind: input, shape index: {}]   ;;  %s3966_s1 = inlined_call_operand.vmem [shape: f32[2,1,16], index: 1, kind: input, shape index: {}]   ;;  %s3967_s2 = inlined_call_operand.vmem [shape: f32[2,128], index: 2, kind: input, shape index: {}]   ;;  %s3968_s3 = inlined_call_operand.hbm [shape: bf16[2,128,256], index: 3, kind: input, shape index: {}]   ;;  %s3969_s4 = inlined_call_operand.hbm [shape: bf16[2,128,256], index: 4, kind: input, shape index: {}]   ;;  %s3970_s5 = inlined_call_operand.hbm [shape: bf16[2,128,256], index: 5, kind: input, shape index: {}]   ;;  %s3971_s6 = inlined_call_operand.vmem [shape: f32[2,1,256], index: 6, kind: input, shape index: {}]   ;;  %s3972_s7 = inlined_call_operand.hbm [shape: bf16[2,256,128], index: 7, kind: input, shape index: {}]   ;;  %s3973_s8 = inlined_call_operand.vmem [shape: f32[2,6,128], index: 8, kind: input, shape index: {}]   ;;  %s3974_s9 = inlined_call_operand.vmem [shape: bf16[2,8,16], index: 9, kind: input, shape index: {}]   ;;  %s3975_s10 = inlined_call_operand.hbm [shape: f32[1,2,8,128], index: 10, kind: output, shape index: {}]  }
   0x1   :  { %3982 = sst [smem:[#allocation18_spill]] %s3974_s9 }
   0x2   :  { %3983 = sst [smem:[#allocation19_spill]] %s3975_s10 }
   0x3   :  { %15 = vsyncpa [#allocation3], 0 }
   0x4   :  { %17 = vsyncpa [#allocation3 + $0x1], 0 }
   0x5   :  { %18 = vsyncpa [#allocation6], 0 }
   0x6   :  { %19 = vsyncpa [#allocation9], 0 }
   0x7   :  { %20 = vsyncpa [#allocation4], 0 }
   0x8   :  { %22 = vsyncpa [#allocation4 + $0x1], 0  ;;  %s3490_s13 = smov 0   ;;  %s3492_s14 = smov 0  }
   0x9   :  { %s3494_s15 = smov 0   ;;  %s3496_s16 = smov 0  }
   0xa LB: > { %3984 = sst [smem:[#allocation16_spill]] %s3408_s13  ;;  %s3511_s17 = sadd.s32 4294967295, %s3420_s16   ;;  %s3420_s16 = sphi %s3496_s16, %s4009_s16   ;;  %s3416_s15 = sphi %s3494_s15, %s4008_s15   ;;  %s3412_s14 = sphi %s3492_s14, %s4007_s14   ;;  %s3408_s13 = sphi %s3490_s13, %s4006_s13  }
   0xb   : > { %s2591_s18 = sadd.s32 4294967294, %s3420_s16   ;;  %p48_p0 = scmp.ne.s32.totalorder %s3412_s14, %s3408_s13 }
   0xc   : > { %p3976_p1 = scmp.eq.s32.totalorder %s3511_s17, 0  ;;  %p277_p3 = scmp.eq.s32.totalorder %s2591_s18, 1 }
   0xd   : > { %p2592_p5 = scmp.ge.s32.totalorder %s3420_s16, 1  ;;  %p284_p7 = scmp.lt.s32.totalorder %s3420_s16, 3 }
   0xe   : > { %p3520_p4 = por %p3976_p1, %p48_p0  ;;  %p3525_p6 = por %p277_p3, %p48_p0 }
   0xf   : > { %p3530_p8 = pnand %p2592_p5, %p284_p7  ;;  %s3422_s22 = smov [#allocation5]  }
  0x10   : > { %s3985_s19 = scalar_select %p3520_p4, 1, 0 }
  0x11   : > { %s3986_s20 = scalar_select %p3525_p6, 1, 0 }
  0x12   : > { %s3988_s21 = scalar_select %p3530_p8, 1, 0 }
  0x13   : > { %3987 = sst [smem:[#allocation17_spill]] %s3986_s20  ;;  %s299_s23 = sshll.u32 %s3422_s22, 4  ;;  %s3534_s23 = int_to_ptr.vmem [resolvable:$true] %s299_s23 }
  0x14   : > { %p2886_p9 = pneg %p3530_p8  ;;  %s3423_s25 = smov [#allocation8]  }
  0x15   : > { %s325_s26 = sshll.u32 %s3423_s25, 4  ;;  %s3424_s27 = smov [#allocation7]   ;;  %s3545_s26 = int_to_ptr.vmem [resolvable:$true] %s325_s26 }
  0x16   : > { %p3541_p11 = pnand %p2886_p9, %p3976_p1  ;;  %s3547_s28 = sshll.u32 %s3424_s27, 4  ;;  %s313_s28 = int_to_ptr.vmem [resolvable:$true] %s3547_s28 }
  0x17   : > { %s3204_s11 = scalar_lea.hbm %s3968_s3, 4096 }
  0x18   : > { %p3205_p12 = scmp.ne.s32.totalorder %s3968_s3, %s3204_s11  ;;  %p3557_p13 = pneg %p3541_p11 }
  0x19   : > { %p3211_p5 = scmp.lt.u32.totalorder %s3204_s11, %s3968_s3 }
  0x1a   : > { %p3207_p0 = pnand %p3557_p13, %p3205_p12 }
  0x1c   : > { %p3208_p3 = pneg %p3207_p0 }
  0x1e   : > { %p3213_p7 = pnand %p3211_p5, %p3208_p3 }
  0x20   : > { %3216 = shalt.err (!%p3213_p7)
}
  0x21   : > { %s3217_s29 = scalar_lea.vmem %s3534_s23, 4096  ;;  %p3225_p2 = scmp.lt.s32.totalorder %s3534_s23, %s3534_s23 }
  0x22   : > { %p3218_p9 = scmp.ne.s32.totalorder %s3534_s23, %s3217_s29  ;;  %p3226_p6 = scmp.lt.s32.totalorder %s3217_s29, %s3217_s29 }
  0x24   : > { %p3220_p10 = pnand %p3218_p9, %p3557_p13  ;;  %p3227_p12 = por %p3226_p6, %p3225_p2 }
  0x26   : > { %p3221_p1 = pneg %p3220_p10 }
  0x28   : > { %p3228_p0 = pnand %p3227_p12, %p3221_p1 }
  0x2a   : > { %3231 = shalt.err (!%p3228_p0)
}
  0x2b   : > { %s3425_s30 = smov 128   ;;  %s3426_s11 = smov 8  }
  0x2c   : > { %2889 = dma.hbm_to_vmem [thread:$0]  (!%p3541_p11), %s3968_s3, 4096, %s3534_s23, [#allocation6], %s3425_s30, %s3425_s30, %s3426_s11  }
  0x2d   : > { %s3232_s29 = scalar_lea.hbm %s3970_s5, 4096 }
  0x2e   : > { %p3233_p1 = scmp.ne.s32.totalorder %s3970_s5, %s3232_s29  ;;  %p3239_p10 = scmp.lt.u32.totalorder %s3232_s29, %s3970_s5 }
  0x30   : > { %p3235_p2 = pnand %p3233_p1, %p3557_p13 }
  0x32   : > { %p3236_p6 = pneg %p3235_p2 }
  0x34   : > { %p3241_p3 = pnand %p3239_p10, %p3236_p6 }
  0x36   : > { %3244 = shalt.err (!%p3241_p3)
}
  0x37   : > { %s3245_s23 = scalar_lea.vmem %s3545_s26, 4096  ;;  %p3253_p12 = scmp.lt.s32.totalorder %s3545_s26, %s3545_s26 }
  0x38   : > { %p3246_p5 = scmp.ne.s32.totalorder %s3545_s26, %s3245_s23  ;;  %p3254_p0 = scmp.lt.s32.totalorder %s3245_s23, %s3245_s23 }
  0x3a   : > { %p3248_p7 = pnand %p3246_p5, %p3557_p13  ;;  %p3255_p1 = por %p3254_p0, %p3253_p12 }
  0x3c   : > { %p3249_p9 = pneg %p3248_p7 }
  0x3e   : > { %p3256_p2 = pnand %p3255_p1, %p3249_p9 }
  0x40   : > { %3259 = shalt.err (!%p3256_p2)
}
  0x41   : > { %2895 = dma.hbm_to_vmem [thread:$0]  (!%p3541_p11), %s3970_s5, 4096, %s3545_s26, [#allocation9], %s3425_s30, %s3425_s30, %s3426_s11  }
  0x42   : > { %s3260_s12 = scalar_lea.hbm %s3969_s4, 4096 }
  0x43   : > { %p3261_p6 = scmp.ne.s32.totalorder %s3969_s4, %s3260_s12  ;;  %p3267_p5 = scmp.lt.u32.totalorder %s3260_s12, %s3969_s4 }
  0x45   : > { %p3263_p10 = pnand %p3261_p6, %p3557_p13 }
  0x47   : > { %p3264_p3 = pneg %p3263_p10 }
  0x49   : > { %p3269_p7 = pnand %p3267_p5, %p3264_p3 }
  0x4b   : > { %3272 = shalt.err (!%p3269_p7)
}
  0x4c   : > { %s3273_s23 = scalar_lea.vmem %s313_s28, 4096  ;;  %p3281_p1 = scmp.lt.s32.totalorder %s313_s28, %s313_s28 }
  0x4d   : > { %p3274_p9 = scmp.ne.s32.totalorder %s313_s28, %s3273_s23  ;;  %p3282_p2 = scmp.lt.s32.totalorder %s3273_s23, %s3273_s23 }
  0x4f   : > { %p3276_p12 = pnand %p3274_p9, %p3557_p13  ;;  %p3283_p4 = por %p3282_p2, %p3281_p1 }
  0x51   : > { %p3277_p0 = pneg %p3276_p12 }
  0x53   : > { %p3284_p8 = pnand %p3283_p4, %p3277_p0 }
  0x55   : > { %3287 = shalt.err (!%p3284_p8)
}
  0x56   : > { %2892 = dma.hbm_to_vmem [thread:$0]  (!%p3541_p11), %s3969_s4, 4096, %s313_s28, [#allocation6], %s3425_s30, %s3425_s30, %s3426_s11  }
  0x57   : > { %s3427_s10 = smov [#allocation10]   ;;  %s3288_s18 = scalar_lea.hbm %s3972_s7, 4096 }
  0x58   : > { %s341_s13 = sshll.u32 %s3427_s10, 4  ;;  %p3289_p4 = scmp.ne.s32.totalorder %s3972_s7, %s3288_s18  ;;  %s342_s13 = int_to_ptr.vmem [resolvable:$true] %s341_s13 }
  0x59   : > { %p3295_p10 = scmp.lt.u32.totalorder %s3288_s18, %s3972_s7 }
  0x5a   : > { %p3291_p8 = pnand %p3289_p4, %p3557_p13 }
  0x5c   : > { %p3292_p6 = pneg %p3291_p8 }
  0x5e   : > { %p3297_p3 = pnand %p3295_p10, %p3292_p6 }
  0x60   : > { %3300 = shalt.err (!%p3297_p3)
}
  0x61   : > { %s3301_s28 = scalar_lea.vmem %s342_s13, 4096  ;;  %p3309_p12 = scmp.lt.s32.totalorder %s342_s13, %s342_s13 }
  0x62   : > { %p3302_p5 = scmp.ne.s32.totalorder %s342_s13, %s3301_s28  ;;  %p3310_p0 = scmp.lt.s32.totalorder %s3301_s28, %s3301_s28 }
  0x64   : > { %p3304_p7 = pnand %p3302_p5, %p3557_p13  ;;  %p3311_p1 = por %p3310_p0, %p3309_p12 }
  0x66   : > { %p3305_p9 = pneg %p3304_p7 }
  0x68   : > { %p3312_p2 = pnand %p3311_p1, %p3305_p9 }
  0x6a   : > { %3315 = shalt.err (!%p3312_p2)
}
  0x6b   : > { %s3428_s26 = smov 64   ;;  %s3429_s22 = smov 4  }
  0x6c   : > { %2898 = dma.hbm_to_vmem [thread:$0]  (!%p3541_p11), %s3972_s7, 4096, %s342_s13, [#allocation9], %s3428_s26, %s3428_s26, %s3429_s22  }
  0x6d   : > { %s3648_s20 = sadd.s32 1, %s3420_s16   ;;  %s35_s18 = sadd.s32 1, %s3416_s15 }
  0x6e   : > { %s32_s12 = ssub.s32 %s3420_s16, %s3648_s20  ;;  %p42_p4 = scmp.ne.s32.totalorder %s3416_s15, %s3412_s14 }
  0x6f   : > { %p33_p13 = scmp.eq.s32.totalorder %s32_s12, 0  ;;  %p43_p8 = scmp.eq.s32.totalorder %s3420_s16, 0 }
  0x70   : > { %p3991_p10 = scmp.eq.s32.totalorder %s3511_s17, 1  ;;  %p2911_p5 = scmp.lt.s32.totalorder %s3420_s16, 2 }
  0x71   : > { %s3657_s25 = scalar_select %p33_p13, %s3416_s15, %s35_s18  }
  0x72   : > { %p44_p6 = por %p43_p8, %p42_p4  ;;  %p3661_p3 = por %p3991_p10, %p42_p4 }
  0x73   : > { %s358_s24 = sand.u32 1, %s3416_s15   ;;  %s2749_s13 = sshll.u32 %s3420_s16, 8 }
  0x74   : > { %s2598_s29 = sshll.u32 %s358_s24, 4  ;;  %s3671_s26 = scalar_lea.hbm %s3965_s0, %s2749_s13 }
  0x75   : > { %s362_s22 = scalar_lea.vmem [#allocation2], %s2598_s29  ;;  %p3675_p11 = pnand %p2911_p5, %p44_p6 }
  0x76   : > { %s369_s9 = sshll.u32 %s362_s22, 4  ;;  %s3679_s12 = scalar_lea.sflag [#allocation3], %s358_s24  ;;  %s3673_s9 = int_to_ptr.vmem [resolvable:$true] %s369_s9 }
  0x77   : > { %s3316_s18 = scalar_lea.hbm %s3671_s26, 256  ;;  %p3318_p9 = pneg %p3675_p11 }
  0x78   : > { %p3317_p7 = scmp.ne.s32.totalorder %s3671_s26, %s3316_s18  ;;  %s3321_s23 = scalar_lea.hbm %s3965_s0, 512 }
  0x79   : > { %p3322_p1 = scmp.lt.u32.totalorder %s3671_s26, %s3965_s0  ;;  %p3323_p2 = scmp.lt.u32.totalorder %s3321_s23, %s3316_s18 }
  0x7a   : > { %p3319_p12 = pnand %p3318_p9, %p3317_p7  ;;  %p3325_p4 = scmp.lt.u32.totalorder %s3316_s18, %s3671_s26 }
  0x7b   : > { %p3324_p13 = por %p3323_p2, %p3322_p1 }
  0x7c   : > { %p3320_p0 = pneg %p3319_p12 }
  0x7d   : > { %p3326_p8 = por %p3325_p4, %p3324_p13 }
  0x7f   : > { %p3327_p6 = pnand %p3326_p8, %p3320_p0 }
  0x81   : > { %3330 = shalt.err (!%p3327_p6)
}
  0x82   : > { %s3331_s24 = scalar_lea.vmem %s3673_s9, 256  ;;  %s3430_s29 = smov [#allocation2]  }
  0x83   : > { %p3332_p10 = scmp.ne.s32.totalorder %s3673_s9, %s3331_s24  ;;  %s3336_s13 = sshll.u32 %s3430_s29, 4  ;;  %s3337_s13 = int_to_ptr.vmem [resolvable:$false] %s3336_s13 }
  0x84   : > { %s3338_s28 = scalar_lea.vmem %s3337_s13, 512  ;;  %p3339_p12 = scmp.lt.s32.totalorder %s3673_s9, %s3337_s13 }
  0x85   : > { %p3334_p5 = pnand %p3332_p10, %p3318_p9  ;;  %p3340_p1 = scmp.lt.s32.totalorder %s3338_s28, %s3331_s24 }
  0x87   : > { %p3335_p7 = pneg %p3334_p5  ;;  %p3341_p2 = por %p3340_p1, %p3339_p12 }
  0x89   : > { %p3342_p13 = pnand %p3341_p2, %p3335_p7 }
  0x8b   : > { %3345 = shalt.err (!%p3342_p13)
}
  0x8c   : > { %2902 = dma.hbm_to_vmem [thread:$0]  (!%p3675_p11), %s3671_s26, 256, %s3673_s9, %s3679_s12, %s3425_s30, %s3425_s30, %s3426_s11  }
  0x8d   : > { %p3994_p9 = scmp.ne.s32.totalorder %s3988_s21, 0 }
  0x8e   : > { %s3713_s18 = sand.u32 (!%p3994_p9), 1, %s3412_s14   ;;  %p3995_p0 = scmp.ne.s32.totalorder (!%p3994_p9), %s3985_s19, 0 }
  0x8f   : > { %394 = sbr.rel (%p3994_p9) target bundleno = 4833 (0x12e1), region = 60  ;;  %s2602_s23 = sshll.u32 (!%p3994_p9), %s3713_s18, 4 }
  0x90   : > { %s397_s22 = scalar_lea.sflag (!%p3994_p9), [#allocation3], %s3713_s18  ;;  %s400_s24 = scalar_lea.vmem (!%p3994_p9), [#allocation2], %s2602_s23 }
  0x96   : > { %3391 = dma.done.wait (%p3995_p0), %s397_s22, 256  }
  0x97   : > { %3393 = vsyncadd (%p3995_p0), %s397_s22, 4294967040  ;;  %p3996_p4 = scmp.eq.s32.totalorder %s3511_s17, 0 }
  0x99   : > { %3395 = dma.done.wait (%p3996_p4), [#allocation6], 8192   ;;  %p3997_p11 = pmov %p3996_p4 }
  0x9a   : > { %p3998_p8 = pmov %p3996_p4 }
  0x9b   : > { %3397 = vsyncadd (%p3997_p11), [#allocation6], 4294959104 }
  0x9c   : > { %3399 = dma.done.wait (%p3998_p8), [#allocation9], 8192   ;;  %p3999_p6 = pmov %p3996_p4 }
  0x9d   : > { %v469_v0 = vld [vmem:[%s400_s24] sm:$0xff]  ;;  %v470_v1 = vld [vmem:[%s400_s24 + $0x8] sm:$0xff]  ;;  %v3431_v42 = vmov 0   ;;  %v3432_v43 = vmov 0.0   ;;  %v494_v48 = vlaneseq  ;;  %vm3433_vm0 = vmmov 0   ;;  %p460_p10 = scmp.lt.s32.totalorder %s3511_s17, 1 }
  0x9e   : > { %3401 = vsyncadd (%p3999_p6), [#allocation9], 4294959104  ;;  %471 = vadd.xlane.f32.xlu0 %v469_v0  ;;  %v2960_v2 = vld [vmem:[#allocation5 + $0x4] ss:$8 sps:$4 sm:$0xff]   ;;  %v2964_v4 = vld [vmem:[#allocation5] ss:$8 sps:$4 sm:$0xff]   ;;  %644 = vmatprep.mubr.bf16.mxu0 %v3431_v42 }
  0x9f   : > { %v2962_v3 = vld [vmem:[#allocation7 + $0x4] ss:$8 sps:$4 sm:$0xff]   ;;  %v2965_v5 = vld [vmem:[#allocation7] ss:$8 sps:$4 sm:$0xff]   ;;  %v2966_v6 = vld [vmem:[#allocation5 + $0x14] ss:$8 sps:$4 sm:$0xff]   ;;  %612 = vmatprep.subr.bf16.mxu0 %v2960_v2  ;;  %785 = vmatprep.mubr.bf16.mxu1 %v3431_v42 }
  0xa0   : > { %v2968_v7 = vld [vmem:[#allocation7 + $0x14] ss:$8 sps:$4 sm:$0xff]   ;;  %753 = vmatprep.subr.bf16.mxu1 %v2962_v3  ;;  %v2970_v8 = vld [vmem:[#allocation5 + $0x10] ss:$8 sps:$4 sm:$0xff]   ;;  %613 = vmatpush1.bf16.msra.mxu0 %v2964_v4  ;;  %v2972_v10 = vld [vmem:[#allocation5 + $0x24] ss:$8 sps:$4 sm:$0xff]  }
  0xa1   : > { %754 = vmatpush1.bf16.msra.mxu1 %v2965_v5  ;;  %v2971_v9 = vld [vmem:[#allocation7 + $0x10] ss:$8 sps:$4 sm:$0xff]   ;;  %v2974_v11 = vld [vmem:[#allocation7 + $0x24] ss:$8 sps:$4 sm:$0xff]   ;;  %614 = vmatprep.subr.bf16.mxu0 %v2966_v6  ;;  %v2976_v12 = vld [vmem:[#allocation5 + $0x20] ss:$8 sps:$4 sm:$0xff]  }
  0xa2   : > { %473 = vadd.xlane.f32.xlu0 %v470_v1  ;;  %755 = vmatprep.subr.bf16.mxu1 %v2968_v7  ;;  %v2977_v13 = vld [vmem:[#allocation7 + $0x20] ss:$8 sps:$4 sm:$0xff]   ;;  %v2978_v22 = vld [vmem:[#allocation5 + $0x34] ss:$8 sps:$4 sm:$0xff]   ;;  %v2982_v24 = vld [vmem:[#allocation5 + $0x30] ss:$8 sps:$4 sm:$0xff]  }
  0xa3   : > { %v2980_v23 = vld [vmem:[#allocation7 + $0x34] ss:$8 sps:$4 sm:$0xff]   ;;  %v2983_v25 = vld [vmem:[#allocation7 + $0x30] ss:$8 sps:$4 sm:$0xff]   ;;  %v2984_v26 = vld [vmem:[#allocation5 + $0x44] ss:$8 sps:$4 sm:$0xff]  }
  0xa4   : > { %615 = vmatpush1.bf16.msra.mxu0 %v2970_v8  ;;  %v2986_v27 = vld [vmem:[#allocation7 + $0x44] ss:$8 sps:$4 sm:$0xff]   ;;  %v2988_v28 = vld [vmem:[#allocation5 + $0x40] ss:$8 sps:$4 sm:$0xff]   ;;  %v2990_v30 = vld [vmem:[#allocation5 + $0x54] ss:$8 sps:$4 sm:$0xff]  }
  0xa5   : > { %756 = vmatpush1.bf16.msra.mxu1 %v2971_v9  ;;  %616 = vmatprep.subr.bf16.mxu0 %v2972_v10  ;;  %v2989_v29 = vld [vmem:[#allocation7 + $0x40] ss:$8 sps:$4 sm:$0xff]   ;;  %v2992_v31 = vld [vmem:[#allocation7 + $0x54] ss:$8 sps:$4 sm:$0xff]   ;;  %v2994_v32 = vld [vmem:[#allocation5 + $0x50] ss:$8 sps:$4 sm:$0xff]  }
  0xa6   : > { %757 = vmatprep.subr.bf16.mxu1 %v2974_v11  ;;  %v2995_v33 = vld [vmem:[#allocation7 + $0x50] ss:$8 sps:$4 sm:$0xff]   ;;  %v2996_v34 = vld [vmem:[#allocation5 + $0x64] ss:$8 sps:$4 sm:$0xff]   ;;  %v3000_v36 = vld [vmem:[#allocation5 + $0x60] ss:$8 sps:$4 sm:$0xff]  }
  0xa7   : > { %v2998_v35 = vld [vmem:[#allocation7 + $0x64] ss:$8 sps:$4 sm:$0xff]   ;;  %v3001_v37 = vld [vmem:[#allocation7 + $0x60] ss:$8 sps:$4 sm:$0xff]   ;;  %v3002_v38 = vld [vmem:[#allocation5 + $0x74] ss:$8 sps:$4 sm:$0xff]  }
  0xa8   : > { %617 = vmatpush1.bf16.msra.mxu0 %v2976_v12  ;;  %v3004_v39 = vld [vmem:[#allocation7 + $0x74] ss:$8 sps:$4 sm:$0xff]   ;;  %v3006_v40 = vld [vmem:[#allocation5 + $0x70] ss:$8 sps:$4 sm:$0xff]   ;;  %v3741_v51 = vshrl.u32 %v494_v48, 7  ;;  %s3774_s30 = scalar_select %p460_p10, %s3511_s17, 1 }
  0xa9   : > { %758 = vmatpush1.bf16.msra.mxu1 %v2977_v13  ;;  %618 = vmatprep.subr.bf16.mxu0 %v2978_v22  ;;  %v3007_v41 = vld [vmem:[#allocation7 + $0x70] ss:$8 sps:$4 sm:$0xff]   ;;  %v468_v53 = vld [vmem:[%s3967_s2] sm:$0x3]  ;;  %vm839_vm1 = vcmask 130048   ;;  %s4000_s26 = sld [smem:[#allocation18_spill]] }
  0xaa   : > { %759 = vmatprep.subr.bf16.mxu1 %v2980_v23  ;;  %v3744_v52 = vsub.s32 0, %v3741_v51  ;;  %v3752_v57 = vsub.s32 1, %v3741_v51  ;;  %s462_s9 = scalar_lea.vmem %s3966_s1, %s3774_s30  ;;  %s2608_s19 = sshll.u32 %s3774_s30, 2 }
  0xab   : > { %s2607_s10 = sshll.u32 %s3713_s18, 3  ;;  %s2746_s13 = sshll.u32 %s3511_s17, 7 }
  0xac   : > { %619 = vmatpush1.bf16.msra.mxu0 %v2982_v24  ;;  %v497_v56 = vrot.slane %v468_v53, %v3744_v52  ;;  %v503_v61 = vrot.slane %v468_v53, %v3752_v57  ;;  %s459_s12 = scalar_lea.vmem [#allocation11], %s2607_s10  ;;  %s4001_s23 = sld [smem:[#allocation19_spill]] }
  0xad   : > { %760 = vmatpush1.bf16.msra.mxu1 %v2983_v25  ;;  %620 = vmatprep.subr.bf16.mxu0 %v2984_v26  ;;  %s2462_s29 = sshll.u32 %s459_s12, 4  ;;  %s2449_s24 = scalar_lea.sflag [#allocation4], %s3713_s18  ;;  %s3918_s29 = int_to_ptr.vmem [resolvable:$true] %s2462_s29 }
  0xae   : > { %761 = vmatprep.subr.bf16.mxu1 %v2986_v27  ;;  %s3434_s17 = smov [#allocation11]  }
  0xaf   : > { %s3350_s21 = sshll.u32 %s3434_s17, 4  ;;  %s3351_s21 = int_to_ptr.vmem [resolvable:$false] %s3350_s21 }
  0xb0   : > { %621 = vmatpush1.bf16.msra.mxu0 %v2988_v28  ;;  %s3352_s11 = scalar_lea.vmem %s3351_s21, 256  ;;  %p3353_p1 = scmp.lt.s32.totalorder %s3918_s29, %s3351_s21 }
  0xb1   : > { %762 = vmatpush1.bf16.msra.mxu1 %v2989_v29  ;;  %622 = vmatprep.subr.bf16.mxu0 %v2990_v30 }
  0xb2   : > { %763 = vmatprep.subr.bf16.mxu1 %v2992_v31  ;;  %s3923_s22 = scalar_lea.hbm %s4001_s23, %s2746_s13 }
  0xb4   : > { %623 = vmatpush1.bf16.msra.mxu0 %v2994_v32 }
  0xb5   : > { %764 = vmatpush1.bf16.msra.mxu1 %v2995_v33  ;;  %624 = vmatprep.subr.bf16.mxu0 %v2996_v34 }
  0xb6   : > { %765 = vmatprep.subr.bf16.mxu1 %v2998_v35 }
  0xb8   : > { %625 = vmatpush1.bf16.msra.mxu0 %v3000_v36 }
  0xb9   : > { %766 = vmatpush1.bf16.msra.mxu1 %v3001_v37  ;;  %626 = vmatprep.subr.bf16.mxu0 %v3002_v38 }
  0xba   : > { %767 = vmatprep.subr.bf16.mxu1 %v3004_v39 }
  0xbc   : > { %627 = vmatpush1.bf16.msra.mxu0 %v3006_v40 }
  0xbd   : > { %768 = vmatpush1.bf16.msra.mxu1 %v3007_v41  ;;  %2812 = vmatprep.subr.bf16.mxu0 %v3432_v43 }
  0xbe   : > { %2818 = vmatprep.subr.bf16.mxu1 %v3432_v43 }
 0x12b   : > { %v472_v14 = vpop.xlane.xlu0 %471 }
 0x12c   : > { %v476_v15 = vmul.f32 0.0078125, %v472_v14  ;;  %v3780_v14 = vld [vmem:[%s462_s9] ss:$0 sm:$0xff]  ;;  %s466_s9 = scalar_lea.vmem %s4000_s26, %s2608_s19  ;;  %s3346_s19 = scalar_lea.vmem %s3918_s29, 128 }
 0x12d   : > { %p3347_p5 = scmp.ne.s32.totalorder %s3918_s29, %s3346_s19  ;;  %p3354_p2 = scmp.lt.s32.totalorder %s3352_s11, %s3346_s19 }
 0x12e   : > { %v3729_v16 = vsub.f32 %v469_v0, %v476_v15 }
 0x12f   : > { %v474_v17 = vpop.xlane.xlu0 %473  ;;  %p3348_p7 = pnand %p3347_p5, %p3661_p3  ;;  %p3355_p13 = por %p3354_p2, %p3353_p1 }
 0x130   : > { %v477_v18 = vmul.f32 0.0078125, %v474_v17  ;;  %v480_v19 = vmul.f32 %v3729_v16, %v3729_v16 }
 0x131   : > { %p3349_p12 = pneg %p3348_p7 }
 0x132   : > { %v3733_v20 = vsub.f32 %v470_v1, %v477_v18  ;;  %482 = vadd.xlane.f32.xlu1 %v480_v19 }
 0x133   : > { %p3356_p9 = pnand %p3355_p13, %p3349_p12 }
 0x134   : > { %v481_v21 = vmul.f32 %v3733_v20, %v3733_v20 }
 0x136   : > { %484 = vadd.xlane.f32.xlu1 %v481_v21 }
 0x1bf   : > { %v483_v44 = vpop.xlane.xlu1 %482 }
 0x1c0   : > { %v486_v45 = vmul.f32 0.0078125, %v483_v44 }
 0x1c2   : > { %v488_v46 = vadd.f32 1e-12, %v486_v45 }
 0x1c3   : > { %v485_v47 = vpop.xlane.xlu1 %484 }
 0x1c4   : > { %3136 = vrsqrt.f32 %v488_v46  ;;  %v487_v49 = vmul.f32 0.0078125, %v485_v47 }
 0x1c6   : > { %v489_v50 = vadd.f32 1e-12, %v487_v49 }
 0x1c8   : > { %3138 = vrsqrt.f32 %v489_v50 }
 0x1ce   : > { %v3137_v54 = vpop.eup %3136 }
 0x1cf   : > { %v492_v55 = vmul.f32 %v3137_v54, %v3729_v16 }
 0x1d1   : > { %v498_v60 = vmul.f32 %v497_v56, %v492_v55 }
 0x1d2   : > { %v3139_v58 = vpop.eup %3138 }
 0x1d3   : > { %v493_v59 = vmul.f32 %v3139_v58, %v3733_v20  ;;  %v3756_v63 = vadd.f32 %v503_v61, %v498_v60 }
 0x1d5   : > { %v499_v62 = vmul.f32 %v497_v56, %v493_v59 }
 0x1d7   : > { %v3758_v0 = vadd.f32 %v503_v61, %v499_v62 }
 0x1d9   : > { %v515_v1 = vpack.c.bf16 %v3758_v0, %v3756_v63 }
 0x1db   : > { %645 = vmatmul.mubr.bf16.vlgmr.msra.gmra.mrb[0].mxu0 %v515_v1  ;;  %786 = vmatmul.mubr.bf16.vlgmr.msra.gmra.mrb[0].mxu1 %v515_v1 }
 0x1dc   : > { %2813 = vmatpush3.bf16.xpose.msra.mxu0 %v515_v1  ;;  %2819 = vmatpush3.bf16.xpose.msra.mxu1 %v515_v1 }
 0x1dd   : > { %2824 = vmatprep.subr.bf16.mxu0 %v3432_v43  ;;  %2830 = vmatprep.subr.bf16.mxu1 %v3432_v43 }
 0x1de   : > { %2814 = vmatprep.mubr.msk.bf16.mxu0 %vm3433_vm0, %v3432_v43  ;;  %2820 = vmatprep.mubr.msk.bf16.mxu1 %vm3433_vm0, %v3432_v43 }
 0x2ae   : > { %v646_v2 = vpop.f32.mrb[0].mxu0  ;;  %v787_v3 = vpop.f32.mrb[0].mxu1 }
 0x2af   : > { %v648_v4 = vpop.f32.mrb[1].mxu0  ;;  %v789_v5 = vpop.f32.mrb[1].mxu1 }
 0x2b0   : > { %v650_v6 = vpop.f32.mrb[2].mxu0  ;;  %v791_v7 = vpop.f32.mrb[2].mxu1 }
 0x2b1   : > { %v655_v8 = vpack.c.bf16 %v650_v6, %v646_v2  ;;  %v796_v9 = vpack.c.bf16 %v791_v7, %v787_v3  ;;  %v652_v10 = vpop.f32.mrb[3].mxu0  ;;  %v793_v11 = vpop.f32.mrb[3].mxu1 }
 0x2b2   : > { %v656_v12 = vpack.c.bf16 %v652_v10, %v648_v4  ;;  %v797_v13 = vpack.c.bf16 %v793_v11, %v789_v5  ;;  %v3800_v11 = vld [vmem:[%s3973_s8] sm:$0x3f] }
 0x2b3   : > { %2815 = vmatmul.mubr.bf16.vlgmr.msra.gmra.mrb[4].mxu0 %v655_v8 }
 0x2b4   : > { %2821 = vmatmul.mubr.bf16.vlgmr.msra.gmra.mrb[4].mxu1 %v656_v12  ;;  %2825 = vmatpush3.bf16.msra.mxu0 %v797_v13 }
 0x2b5   : > { %2831 = vmatpush3.bf16.msra.mxu1 %v796_v9  ;;  %2832 = vmatprep.mubr.msk.bf16.mxu1 %vm3433_vm0, %v3432_v43 }
 0x2b6   : > { %2826 = vmatprep.mubr.msk.bf16.mxu0 %vm3433_vm0, %v3432_v43 }
 0x386   : > { %v832_v15 = vpop.f32.mrb[4].mxu0 }
 0x387   : > { %v833_v16 = vadd.f32 %v3780_v14, %v832_v15  ;;  %v2816_v17 = vpop.f32.mrb[5].mxu0  ;;  %v897_v18 = vpop.f32.mrb[4].mxu1 }
 0x388   : > { %v835_v19 = vpop.f32.mrb[6].mxu0  ;;  %v2822_v20 = vpop.f32.mrb[5].mxu1  ;;  %v898_v21 = vadd.f32 %v3780_v14, %v897_v18  ;;  %v1020_v17 = vrot.slane %v3800_v11, %v3744_v52 }
 0x389   : > { %v836_v22 = vadd.f32 %v3780_v14, %v835_v19  ;;  %v2817_v23 = vpop.f32.mrb[7].mxu0  ;;  %v900_v24 = vpop.f32.mrb[6].mxu1  ;;  %v840_v25 = vsel %vm839_vm1, %v833_v16, -inf }
 0x38a   : > { %841 = vmax.xlane.f32.xlu0 %v840_v25  ;;  %v2823_v26 = vpop.f32.mrb[7].mxu1  ;;  %v901_v27 = vadd.f32 %v3780_v14, %v900_v24  ;;  %v904_v29 = vsel %vm839_vm1, %v898_v21, -inf  ;;  %v3008_v25 = vld [vmem:[#allocation8] ss:$8 sps:$4 sm:$0xff]  }
 0x38b   : > { %v843_v28 = vsel %vm839_vm1, %v836_v22, -inf  ;;  %v3010_v26 = vld [vmem:[#allocation8 + $0x4] ss:$8 sps:$4 sm:$0xff]  }
 0x38c   : > { %844 = vmax.xlane.f32.xlu1 %v843_v28  ;;  %v907_v30 = vsel %vm839_vm1, %v901_v27, -inf  ;;  %1166 = vmatprep.subr.bf16.mxu0 %v3010_v26  ;;  %v3011_v28 = vld [vmem:[#allocation8 + $0x10] ss:$8 sps:$4 sm:$0xff]   ;;  %v1074_v26 = vld [vmem:[%s3971_s6] sm:$0x3] }
 0x38e   : > { %905 = vmax.xlane.f32.xlu0 %v904_v29 }
 0x390   : > { %908 = vmax.xlane.f32.xlu1 %v907_v30 }
 0x417   : > { %v842_v31 = vpop.xlane.xlu0 %841 }
 0x418   : > { %v846_v32 = vsub.f32 %v833_v16, %v842_v31 }
 0x419   : > { %v845_v33 = vpop.xlane.xlu1 %844 }
 0x41a   : > { %v848_v34 = vmul.f32 1.442695, %v846_v32  ;;  %v847_v35 = vsub.f32 %v836_v22, %v845_v33 }
 0x41b   : > { %v906_v36 = vpop.xlane.xlu0 %905 }
 0x41c   : > { %3140 = vpow2.f32 %v848_v34  ;;  %v850_v37 = vmul.f32 1.442695, %v847_v35  ;;  %v910_v38 = vsub.f32 %v898_v21, %v906_v36  ;;  %v3016_v35 = vld [vmem:[#allocation8 + $0x24] ss:$8 sps:$4 sm:$0xff]   ;;  %v3014_v36 = vld [vmem:[#allocation8 + $0x20] ss:$8 sps:$4 sm:$0xff]  }
 0x41d   : > { %v909_v39 = vpop.xlane.xlu1 %908 }
 0x41e   : > { %3142 = vpow2.f32 %v850_v37  ;;  %v912_v40 = vmul.f32 1.442695, %v910_v38  ;;  %v911_v41 = vsub.f32 %v901_v27, %v909_v39  ;;  %v3013_v27 = vld [vmem:[#allocation8 + $0x14] ss:$8 sps:$4 sm:$0xff]   ;;  %v3017_v38 = vld [vmem:[#allocation8 + $0x30] ss:$8 sps:$4 sm:$0xff]  }
 0x41f   : > { %v3019_v37 = vld [vmem:[#allocation8 + $0x34] ss:$8 sps:$4 sm:$0xff]   ;;  %v3022_v39 = vld [vmem:[#allocation8 + $0x44] ss:$8 sps:$4 sm:$0xff]  }
 0x420   : > { %3144 = vpow2.f32 %v912_v40  ;;  %v914_v44 = vmul.f32 1.442695, %v911_v41  ;;  %v3020_v40 = vld [vmem:[#allocation8 + $0x40] ss:$8 sps:$4 sm:$0xff]   ;;  %v3025_v41 = vld [vmem:[#allocation8 + $0x54] ss:$8 sps:$4 sm:$0xff]  }
 0x422   : > { %3146 = vpow2.f32 %v914_v44  ;;  %v3023_v44 = vld [vmem:[#allocation8 + $0x50] ss:$8 sps:$4 sm:$0xff]  }
 0x426   : > { %v3141_v45 = vpop.eup %3140 }
 0x427   : > { %v852_v46 = vsel %vm839_vm1, %v3141_v45, 0.0 }
 0x428   : > { %v3143_v47 = vpop.eup %3142  ;;  %853 = vadd.xlane.f32.xlu0 %v852_v46  ;;  %v3026_v46 = vld [vmem:[#allocation8 + $0x60] ss:$8 sps:$4 sm:$0xff]  }
 0x429   : > { %v855_v48 = vsel %vm839_vm1, %v3143_v47, 0.0 }
 0x42a   : > { %v3145_v49 = vpop.eup %3144  ;;  %856 = vadd.xlane.f32.xlu1 %v855_v48  ;;  %v3029_v48 = vld [vmem:[#allocation8 + $0x70] ss:$8 sps:$4 sm:$0xff]  }
 0x42b   : > { %v916_v50 = vsel %vm839_vm1, %v3145_v49, 0.0 }
 0x42c   : > { %v3147_v53 = vpop.eup %3146  ;;  %917 = vadd.xlane.f32.xlu0 %v916_v50 }
 0x42d   : > { %v919_v54 = vsel %vm839_vm1, %v3147_v53, 0.0 }
 0x42e   : > { %920 = vadd.xlane.f32.xlu1 %v919_v54 }
 0x4b5   : > { %v854_v55 = vpop.xlane.xlu0 %853 }
 0x4b6   : > { %3148 = vrcp.f32 %v854_v55 }
 0x4b7   : > { %v857_v56 = vpop.xlane.xlu1 %856 }
 0x4b8   : > { %3150 = vrcp.f32 %v857_v56 }
 0x4b9   : > { %v918_v58 = vpop.xlane.xlu0 %917 }
 0x4ba   : > { %3152 = vrcp.f32 %v918_v58  ;;  %v1048_v58 = vrot.slane %v3800_v11, %v3752_v57 }
 0x4bb   : > { %v921_v59 = vpop.xlane.xlu1 %920 }
 0x4bc   : > { %3154 = vrcp.f32 %v921_v59  ;;  %v1053_v59 = vsub.s32 2, %v3741_v51 }
 0x4c0   : > { %v3149_v60 = vpop.eup %3148 }
 0x4c1   : > { %v860_v62 = vmul.f32 %v3149_v60, %v3141_v45  ;;  %v3028_v45 = vld [vmem:[#allocation8 + $0x64] ss:$8 sps:$4 sm:$0xff]  }
 0x4c2   : > { %v3151_v61 = vpop.eup %3150 }
 0x4c3   : > { %v861_v1 = vmul.f32 %v3151_v61, %v3143_v47  ;;  %v3031_v47 = vld [vmem:[#allocation8 + $0x74] ss:$8 sps:$4 sm:$0xff]  }
 0x4c4   : > { %v3153_v2 = vpop.eup %3152 }
 0x4c5   : > { %v862_v3 = vpack.c.bf16 %v861_v1, %v860_v62  ;;  %v924_v5 = vmul.f32 %v3153_v2, %v3145_v49 }
 0x4c6   : > { %v3155_v4 = vpop.eup %3154 }
 0x4c7   : > { %v925_v6 = vmul.f32 %v3155_v4, %v3147_v53  ;;  %2833 = vmatmul.mubr.msk.bf16.vlgmr.msra.gmra.mrb[8].mxu1 %vm839_vm1, %v862_v3  ;;  %v1054_v3 = vrot.slane %v3800_v11, %v1053_v59 }
 0x4c9   : > { %v926_v7 = vpack.c.bf16 %v925_v6, %v924_v5 }
 0x4cb   : > { %2827 = vmatmul.mubr.msk.bf16.vlgmr.msra.gmra.mrb[8].mxu0 %vm839_vm1, %v926_v7 }
 0x4cc   : > { %1198 = vmatprep.mubr.bf16.mxu0 %v3431_v42  ;;  %1167 = vmatpush1.bf16.msra.mxu0 %v3008_v25  ;;  %v3047_v25 = vld [vmem:[#allocation10 + $0x38] sm:$0xff]  }
 0x4cd   : > { %1168 = vmatprep.subr.bf16.mxu0 %v3013_v27  ;;  %v1079_v27 = vrot.slane %v1074_v26, %v3744_v52 }
 0x4d0   : > { %1169 = vmatpush1.bf16.msra.mxu0 %v3011_v28  ;;  %v1083_v28 = vrot.slane %v1074_v26, %v3752_v57 }
 0x4d1   : > { %1170 = vmatprep.subr.bf16.mxu0 %v3016_v35 }
 0x4d4   : > { %1171 = vmatpush1.bf16.msra.mxu0 %v3014_v36 }
 0x4d5   : > { %1172 = vmatprep.subr.bf16.mxu0 %v3019_v37 }
 0x4d8   : > { %1173 = vmatpush1.bf16.msra.mxu0 %v3017_v38 }
 0x4d9   : > { %1174 = vmatprep.subr.bf16.mxu0 %v3022_v39 }
 0x4dc   : > { %1175 = vmatpush1.bf16.msra.mxu0 %v3020_v40 }
 0x4dd   : > { %1176 = vmatprep.subr.bf16.mxu0 %v3025_v41 }
 0x4e0   : > { %1177 = vmatpush1.bf16.msra.mxu0 %v3023_v44 }
 0x4e1   : > { %1178 = vmatprep.subr.bf16.mxu0 %v3028_v45 }
 0x4e4   : > { %1179 = vmatpush1.bf16.msra.mxu0 %v3026_v46 }
 0x4e5   : > { %1180 = vmatprep.subr.bf16.mxu0 %v3031_v47 }
 0x4e8   : > { %1181 = vmatpush1.bf16.msra.mxu0 %v3029_v48 }
 0x59a   : > { %v1008_v8 = vpop.f32.mrb[8].mxu1 }
 0x59b   : > { %v2834_v9 = vpop.f32.mrb[9].mxu1 }
 0x59c   : > { %v1011_v10 = vpop.f32.mrb[10].mxu1  ;;  %v3033_v9 = vld [vmem:[#allocation10] sm:$0xff]  }
 0x59d   : > { %v2835_v12 = vpop.f32.mrb[11].mxu1 }
 0x59e   : > { %v964_v13 = vpop.f32.mrb[8].mxu0  ;;  %v3035_v12 = vld [vmem:[#allocation10 + $0x8] sm:$0xff]  }
 0x59f   : > { %v1009_v15 = vadd.f32 %v1008_v8, %v964_v13  ;;  %v2828_v16 = vpop.f32.mrb[9].mxu0  ;;  %v3032_v8 = vld [vmem:[#allocation10 + $0x40] sm:$0xff]   ;;  %v3036_v13 = vld [vmem:[#allocation10 + $0x50] sm:$0xff]  }
 0x5a0   : > { %v967_v18 = vpop.f32.mrb[10].mxu0  ;;  %2758 = vmatprep.subr.bf16.mxu1 %v3032_v8  ;;  %v3038_v16 = vld [vmem:[#allocation10 + $0x58] sm:$0xff]  }
 0x5a1   : > { %v1015_v19 = vadd.f32 %v1009_v15, %v3756_v63  ;;  %v1012_v20 = vadd.f32 %v1011_v10, %v967_v18  ;;  %v2829_v21 = vpop.f32.mrb[11].mxu0  ;;  %2759 = vmatpush3.bf16.msra.mxu1 %v3033_v9  ;;  %v3034_v10 = vld [vmem:[#allocation10 + $0x48] sm:$0xff]   ;;  %v3037_v15 = vld [vmem:[#allocation10 + $0x10] sm:$0xff]   ;;  %v3040_v18 = vld [vmem:[#allocation10 + $0x60] sm:$0xff]  }
 0x5a2   : > { %2760 = vmatprep.subr.bf16.mxu1 %v3034_v10  ;;  %v3043_v21 = vld [vmem:[#allocation10 + $0x28] sm:$0xff]  }
 0x5a3   : > { %v1016_v22 = vadd.f32 %v1012_v20, %v3758_v0  ;;  %v1021_v23 = vadd.f32 %v1020_v17, %v1015_v19  ;;  %v3041_v19 = vld [vmem:[#allocation10 + $0x20] sm:$0xff]   ;;  %v3042_v20 = vld [vmem:[#allocation10 + $0x68] sm:$0xff]  }
 0x5a5   : > { %1023 = vadd.xlane.f32.xlu0 %v1021_v23  ;;  %v1022_v24 = vadd.f32 %v1020_v17, %v1016_v22  ;;  %2761 = vmatpush3.bf16.msra.mxu1 %v3035_v12  ;;  %v3039_v17 = vld [vmem:[#allocation10 + $0x18] sm:$0xff]   ;;  %v3044_v22 = vld [vmem:[#allocation10 + $0x70] sm:$0xff]  }
 0x5a6   : > { %2762 = vmatprep.subr.bf16.mxu1 %v3036_v13 }
 0x5a7   : > { %1025 = vadd.xlane.f32.xlu1 %v1022_v24 }
 0x5a9   : > { %2763 = vmatpush3.bf16.msra.mxu1 %v3037_v15 }
 0x5aa   : > { %2764 = vmatprep.subr.bf16.mxu1 %v3038_v16 }
 0x5ad   : > { %2765 = vmatpush3.bf16.msra.mxu1 %v3039_v17 }
 0x5ae   : > { %2766 = vmatprep.subr.bf16.mxu1 %v3040_v18 }
 0x5b1   : > { %2767 = vmatpush3.bf16.msra.mxu1 %v3041_v19 }
 0x5b2   : > { %2768 = vmatprep.subr.bf16.mxu1 %v3042_v20 }
 0x5b5   : > { %2769 = vmatpush3.bf16.msra.mxu1 %v3043_v21  ;;  %v1281_v21 = vsub.s32 3, %v3741_v51 }
 0x5b6   : > { %2770 = vmatprep.subr.bf16.mxu1 %v3044_v22 }
 0x632   : > { %v1024_v29 = vpop.xlane.xlu0 %1023 }
 0x633   : > { %v1027_v30 = vmul.f32 0.0078125, %v1024_v29 }
 0x634   : > { %v1026_v31 = vpop.xlane.xlu1 %1025 }
 0x635   : > { %v1029_v63 = vsub.f32 %v1021_v23, %v1027_v30  ;;  %v1028_v32 = vmul.f32 0.0078125, %v1026_v31  ;;  %v3045_v23 = vld [vmem:[#allocation10 + $0x30] sm:$0xff]  }
 0x636   : > { %2771 = vmatpush3.bf16.msra.mxu1 %v3045_v23  ;;  %v1282_v23 = vrot.slane %v3800_v11, %v1281_v21 }
 0x637   : > { %v1030_v33 = vsub.f32 %v1022_v24, %v1028_v32  ;;  %v1031_v34 = vmul.f32 %v1029_v63, %v1029_v63  ;;  %v3046_v24 = vld [vmem:[#allocation10 + $0x78] sm:$0xff]  }
 0x638   : > { %2772 = vmatprep.subr.bf16.mxu1 %v3046_v24 }
 0x639   : > { %1033 = vadd.xlane.f32.xlu0 %v1031_v34  ;;  %v1032_v0 = vmul.f32 %v1030_v33, %v1030_v33 }
 0x63a   : > { %2773 = vmatpush3.bf16.msra.mxu1 %v3047_v25 }
 0x63b   : > { %1035 = vadd.xlane.f32.xlu1 %v1032_v0 }
 0x6c6   : > { %v1034_v49 = vpop.xlane.xlu0 %1033 }
 0x6c7   : > { %v1037_v50 = vmul.f32 0.0078125, %v1034_v49 }
 0x6c8   : > { %v1036_v53 = vpop.xlane.xlu1 %1035 }
 0x6c9   : > { %v1039_v54 = vadd.f32 1e-12, %v1037_v50  ;;  %v1038_v55 = vmul.f32 0.0078125, %v1036_v53 }
 0x6cb   : > { %3156 = vrsqrt.f32 %v1039_v54  ;;  %v1040_v56 = vadd.f32 1e-12, %v1038_v55 }
 0x6cd   : > { %3158 = vrsqrt.f32 %v1040_v56 }
 0x6d5   : > { %v3157_v60 = vpop.eup %3156 }
 0x6d6   : > { %v1043_v61 = vmul.f32 %v3157_v60, %v1029_v63 }
 0x6d7   : > { %v3159_v62 = vpop.eup %3158 }
 0x6d8   : > { %v1044_v1 = vmul.f32 %v3159_v62, %v1030_v33  ;;  %v1049_v2 = vmul.f32 %v1048_v58, %v1043_v61 }
 0x6da   : > { %v1050_v4 = vmul.f32 %v1048_v58, %v1044_v1  ;;  %v3812_v5 = vadd.f32 %v1054_v3, %v1049_v2 }
 0x6dc   : > { %v3814_v6 = vadd.f32 %v1054_v3, %v1050_v4 }
 0x6de   : > { %v1057_v7 = vpack.c.bf16 %v3814_v6, %v3812_v5 }
 0x6e0   : > { %1199 = vmatmul.mubr.bf16.vlgmr.msra.gmra.mrb[12].mxu0 %v1057_v7 }
 0x6e1   : > { %1588 = vmatprep.mubr.bf16.mxu0 %v3431_v42 }
 0x7b3   : > { %v1200_v29 = vpop.f32.mrb[12].mxu0 }
 0x7b4   : > { %v1201_v30 = vadd.f32 %v1200_v29, %v1079_v27  ;;  %v1202_v31 = vpop.f32.mrb[13].mxu0 }
 0x7b5   : > { %v1203_v63 = vadd.f32 %v1202_v31, %v1083_v28  ;;  %v1204_v32 = vpop.f32.mrb[14].mxu0 }
 0x7b6   : > { %v1213_v33 = vmul.f32 0.044715, %v1201_v30  ;;  %v1205_v34 = vadd.f32 %v1204_v32, %v1079_v27  ;;  %v1206_v0 = vpop.f32.mrb[15].mxu0  ;;  %v1209_v7 = vmul.f32 0.5, %v1201_v30  ;;  %v3048_v32 = vld [vmem:[#allocation5 + $0x80] ss:$8 sps:$4 sm:$0xff]  }
 0x7b7   : > { %v1214_v35 = vmul.f32 0.044715, %v1203_v63  ;;  %v1207_v36 = vadd.f32 %v1206_v0, %v1083_v28  ;;  %v1210_v10 = vmul.f32 0.5, %v1203_v63  ;;  %v3053_v0 = vld [vmem:[#allocation7 + $0x84] ss:$8 sps:$4 sm:$0xff]  }
 0x7b8   : > { %v1217_v37 = vmul.f32 %v1213_v33, %v1201_v30  ;;  %v1215_v38 = vmul.f32 0.044715, %v1205_v34  ;;  %v1211_v8 = vmul.f32 0.5, %v1205_v34  ;;  %v3050_v33 = vld [vmem:[#allocation5 + $0x84] ss:$8 sps:$4 sm:$0xff]   ;;  %1698 = vmatprep.subr.bf16.mxu1 %v3053_v0 }
 0x7b9   : > { %v1218_v39 = vmul.f32 %v1214_v35, %v1203_v63  ;;  %v1216_v40 = vmul.f32 0.044715, %v1207_v36  ;;  %v1212_v12 = vmul.f32 0.5, %v1207_v36  ;;  %v3056_v35 = vld [vmem:[#allocation5 + $0x94] ss:$8 sps:$4 sm:$0xff]   ;;  %1556 = vmatprep.subr.bf16.mxu0 %v3050_v33 }
 0x7ba   : > { %v1221_v41 = vmul.f32 %v1217_v37, %v1201_v30  ;;  %v1219_v44 = vmul.f32 %v1215_v38, %v1205_v34  ;;  %1557 = vmatpush1.bf16.msra.mxu0 %v3048_v32  ;;  %v3054_v37 = vld [vmem:[#allocation5 + $0x90] ss:$8 sps:$4 sm:$0xff]  }
 0x7bb   : > { %v1222_v45 = vmul.f32 %v1218_v39, %v1203_v63  ;;  %v1220_v46 = vmul.f32 %v1216_v40, %v1207_v36  ;;  %1558 = vmatprep.subr.bf16.mxu0 %v3056_v35  ;;  %v3057_v38 = vld [vmem:[#allocation7 + $0x90] ss:$8 sps:$4 sm:$0xff]   ;;  %v3062_v39 = vld [vmem:[#allocation5 + $0xa4] ss:$8 sps:$4 sm:$0xff]   ;;  %v3060_v40 = vld [vmem:[#allocation5 + $0xa0] ss:$8 sps:$4 sm:$0xff]  }
 0x7bc   : > { %v1225_v47 = vadd.f32 %v1221_v41, %v1201_v30  ;;  %v1223_v48 = vmul.f32 %v1219_v44, %v1205_v34  ;;  %v3068_v41 = vld [vmem:[#allocation5 + $0xb4] ss:$8 sps:$4 sm:$0xff]  }
 0x7bd   : > { %v1224_v49 = vmul.f32 %v1220_v46, %v1207_v36  ;;  %v1226_v50 = vadd.f32 %v1222_v45, %v1203_v63  ;;  %v3071_v44 = vld [vmem:[#allocation7 + $0xb4] ss:$8 sps:$4 sm:$0xff]   ;;  %v3066_v45 = vld [vmem:[#allocation5 + $0xb0] ss:$8 sps:$4 sm:$0xff]  }
 0x7be   : > { %v1229_v53 = vmul.f32 0.7978846, %v1225_v47  ;;  %v1227_v54 = vadd.f32 %v1223_v48, %v1205_v34  ;;  %v3051_v34 = vld [vmem:[#allocation7 + $0x80] ss:$8 sps:$4 sm:$0xff]   ;;  %1559 = vmatpush1.bf16.msra.mxu0 %v3054_v37  ;;  %v3069_v46 = vld [vmem:[#allocation7 + $0xb0] ss:$8 sps:$4 sm:$0xff]  }
 0x7bf   : > { %v1228_v55 = vadd.f32 %v1224_v49, %v1207_v36  ;;  %v1230_v56 = vmul.f32 0.7978846, %v1226_v50  ;;  %v3059_v36 = vld [vmem:[#allocation7 + $0x94] ss:$8 sps:$4 sm:$0xff]   ;;  %1560 = vmatprep.subr.bf16.mxu0 %v3062_v39 }
 0x7c0   : > { %3160 = vtanh.f32 %v1229_v53  ;;  %v1231_v58 = vmul.f32 0.7978846, %v1227_v54 }
 0x7c1   : > { %v1232_v60 = vmul.f32 0.7978846, %v1228_v55  ;;  %3162 = vtanh.f32 %v1230_v56 }
 0x7c2   : > { %3164 = vtanh.f32 %v1231_v58  ;;  %1561 = vmatpush1.bf16.msra.mxu0 %v3060_v40  ;;  %v3074_v58 = vld [vmem:[#allocation5 + $0xc4] ss:$8 sps:$4 sm:$0xff]  }
 0x7c3   : > { %3166 = vtanh.f32 %v1232_v60  ;;  %1562 = vmatprep.subr.bf16.mxu0 %v3068_v41  ;;  %v3077_v60 = vld [vmem:[#allocation7 + $0xc4] ss:$8 sps:$4 sm:$0xff]  }
 0x7c6   : > { %1563 = vmatpush1.bf16.msra.mxu0 %v3066_v45 }
 0x7c7   : > { %1564 = vmatprep.subr.bf16.mxu0 %v3074_v58 }
 0x7ca   : > { %v3161_v61 = vpop.eup %3160 }
 0x7cb   : > { %v3163_v62 = vpop.eup %3162  ;;  %v1237_v1 = vadd.f32 1.0, %v3161_v61  ;;  %v3072_v61 = vld [vmem:[#allocation5 + $0xc0] ss:$8 sps:$4 sm:$0xff]  }
 0x7cc   : > { %v3165_v2 = vpop.eup %3164  ;;  %v1238_v3 = vadd.f32 1.0, %v3163_v62  ;;  %v3075_v62 = vld [vmem:[#allocation7 + $0xc0] ss:$8 sps:$4 sm:$0xff]   ;;  %1565 = vmatpush1.bf16.msra.mxu0 %v3072_v61 }
 0x7cd   : > { %v3167_v4 = vpop.eup %3166  ;;  %v1239_v9 = vadd.f32 1.0, %v3165_v2  ;;  %v1241_v15 = vmul.f32 %v1237_v1, %v1209_v7  ;;  %v3080_v1 = vld [vmem:[#allocation5 + $0xd4] ss:$8 sps:$4 sm:$0xff]   ;;  %v3086_v7 = vld [vmem:[#allocation5 + $0xe4] ss:$8 sps:$4 sm:$0xff]  }
 0x7ce   : > { %v1240_v13 = vadd.f32 1.0, %v3167_v4  ;;  %v1242_v17 = vmul.f32 %v1238_v3, %v1210_v10  ;;  %v3083_v2 = vld [vmem:[#allocation7 + $0xd4] ss:$8 sps:$4 sm:$0xff]   ;;  %v3078_v3 = vld [vmem:[#allocation5 + $0xd0] ss:$8 sps:$4 sm:$0xff]   ;;  %1566 = vmatprep.subr.bf16.mxu0 %v3080_v1 }
 0x7cf   : > { %v1243_v16 = vmul.f32 %v1239_v9, %v1211_v8  ;;  %v3081_v4 = vld [vmem:[#allocation7 + $0xd0] ss:$8 sps:$4 sm:$0xff]   ;;  %v3089_v8 = vld [vmem:[#allocation7 + $0xe4] ss:$8 sps:$4 sm:$0xff]   ;;  %v3084_v9 = vld [vmem:[#allocation5 + $0xe0] ss:$8 sps:$4 sm:$0xff]  }
 0x7d0   : > { %v1244_v18 = vmul.f32 %v1240_v13, %v1212_v12  ;;  %1567 = vmatpush1.bf16.msra.mxu0 %v3078_v3  ;;  %v3087_v10 = vld [vmem:[#allocation7 + $0xe0] ss:$8 sps:$4 sm:$0xff]   ;;  %v3092_v12 = vld [vmem:[#allocation5 + $0xf4] ss:$8 sps:$4 sm:$0xff]  }
 0x7d1   : > { %v1245_v19 = vpack.c.bf16 %v1243_v16, %v1241_v15  ;;  %1568 = vmatprep.subr.bf16.mxu0 %v3086_v7  ;;  %v3095_v13 = vld [vmem:[#allocation7 + $0xf4] ss:$8 sps:$4 sm:$0xff]   ;;  %v3090_v15 = vld [vmem:[#allocation5 + $0xf0] ss:$8 sps:$4 sm:$0xff]  }
 0x7d2   : > { %v1246_v20 = vpack.c.bf16 %v1244_v18, %v1242_v17  ;;  %v3093_v16 = vld [vmem:[#allocation7 + $0xf0] ss:$8 sps:$4 sm:$0xff]  }
 0x7d4   : > { %1411 = vmatprep.mubr.bf16.mxu1 %v1246_v20  ;;  %1569 = vmatpush1.bf16.msra.mxu0 %v3084_v9 }
 0x7d5   : > { %1412 = vmatmul.mubr.bf16.vlgmr.msra.gmra.mrb[12].mxu1 %v1245_v19  ;;  %1570 = vmatprep.subr.bf16.mxu0 %v3092_v12 }
 0x7d6   : > { %1730 = vmatprep.mubr.bf16.mxu1 %v3431_v42  ;;  %1699 = vmatpush1.bf16.msra.mxu1 %v3051_v34 }
 0x7d7   : > { %1700 = vmatprep.subr.bf16.mxu1 %v3059_v36 }
 0x7d8   : > { %1571 = vmatpush1.bf16.msra.mxu0 %v3090_v15 }
 0x7d9   : > { %2836 = vmatprep.subr.bf16.mxu0 %v3432_v43 }
 0x7da   : > { %1701 = vmatpush1.bf16.msra.mxu1 %v3057_v38 }
 0x8a8   : > { %v2774_v22 = vpop.f32.mrb[12].mxu1 }
 0x8a9   : > { %v2775_v24 = vpop.f32.mrb[13].mxu1 }
 0x8aa   : > { %v2776_v25 = vadd.f32 %v2775_v24, %v2774_v22  ;;  %v2777_v26 = vpop.f32.mrb[14].mxu1  ;;  %v1446_v24 = vsub.s32 4, %v3741_v51 }
 0x8ab   : > { %v2778_v27 = vpop.f32.mrb[15].mxu1 }
 0x8ac   : > { %v1414_v28 = vadd.f32 %v2776_v25, %v1282_v23  ;;  %v2779_v29 = vadd.f32 %v2778_v27, %v2777_v26  ;;  %v1447_v25 = vrot.slane %v3800_v11, %v1446_v24  ;;  %v1452_v26 = vsub.s32 5, %v3741_v51 }
 0x8ae   : > { %v1417_v30 = vadd.f32 %v2779_v29, %v1282_v23  ;;  %v1420_v31 = vadd.f32 %v1414_v28, %v3812_v5  ;;  %v3065_v5 = vld [vmem:[#allocation7 + $0xa4] ss:$8 sps:$4 sm:$0xff]  }
 0x8af   : > { %1702 = vmatprep.subr.bf16.mxu1 %v3065_v5 }
 0x8b0   : > { %1422 = vadd.xlane.f32.xlu0 %v1420_v31  ;;  %v1421_v63 = vadd.f32 %v1417_v30, %v3814_v6  ;;  %v3063_v6 = vld [vmem:[#allocation7 + $0xa0] ss:$8 sps:$4 sm:$0xff]  }
 0x8b1   : > { %1703 = vmatpush1.bf16.msra.mxu1 %v3063_v6 }
 0x8b2   : > { %1424 = vadd.xlane.f32.xlu1 %v1421_v63  ;;  %1704 = vmatprep.subr.bf16.mxu1 %v3071_v44 }
 0x8b5   : > { %1705 = vmatpush1.bf16.msra.mxu1 %v3069_v46 }
 0x8b6   : > { %1706 = vmatprep.subr.bf16.mxu1 %v3077_v60 }
 0x8b9   : > { %1707 = vmatpush1.bf16.msra.mxu1 %v3075_v62 }
 0x8ba   : > { %1708 = vmatprep.subr.bf16.mxu1 %v3083_v2 }
 0x8bd   : > { %1709 = vmatpush1.bf16.msra.mxu1 %v3081_v4 }
 0x8be   : > { %1710 = vmatprep.subr.bf16.mxu1 %v3089_v8 }
 0x8c1   : > { %1711 = vmatpush1.bf16.msra.mxu1 %v3087_v10 }
 0x8c2   : > { %1712 = vmatprep.subr.bf16.mxu1 %v3095_v13 }
 0x8c5   : > { %1713 = vmatpush1.bf16.msra.mxu1 %v3093_v16 }
 0x8c6   : > { %2842 = vmatprep.subr.bf16.mxu1 %v3432_v43 }
 0x93d   : > { %v1423_v47 = vpop.xlane.xlu0 %1422 }
 0x93e   : > { %v1426_v48 = vmul.f32 0.0078125, %v1423_v47 }
 0x93f   : > { %v1425_v49 = vpop.xlane.xlu1 %1424 }
 0x940   : > { %v1428_v50 = vsub.f32 %v1420_v31, %v1426_v48  ;;  %v1427_v53 = vmul.f32 0.0078125, %v1425_v49 }
 0x942   : > { %v1429_v54 = vsub.f32 %v1421_v63, %v1427_v53  ;;  %v1430_v55 = vmul.f32 %v1428_v50, %v1428_v50  ;;  %v1453_v63 = vrot.slane %v3800_v11, %v1452_v26 }
 0x944   : > { %1432 = vadd.xlane.f32.xlu0 %v1430_v55  ;;  %v1431_v56 = vmul.f32 %v1429_v54, %v1429_v54 }
 0x946   : > { %1434 = vadd.xlane.f32.xlu1 %v1431_v56 }
 0x9d1   : > { %v1433_v17 = vpop.xlane.xlu0 %1432 }
 0x9d2   : > { %v1436_v18 = vmul.f32 0.0078125, %v1433_v17 }
 0x9d3   : > { %v1435_v19 = vpop.xlane.xlu1 %1434 }
 0x9d4   : > { %v1438_v20 = vadd.f32 1e-12, %v1436_v18  ;;  %v1437_v22 = vmul.f32 0.0078125, %v1435_v19 }
 0x9d6   : > { %3168 = vrsqrt.f32 %v1438_v20  ;;  %v1439_v23 = vadd.f32 1e-12, %v1437_v22 }
 0x9d8   : > { %3170 = vrsqrt.f32 %v1439_v23 }
 0x9e0   : > { %v3169_v27 = vpop.eup %3168 }
 0x9e1   : > { %v1442_v28 = vmul.f32 %v3169_v27, %v1428_v50 }
 0x9e2   : > { %v3171_v29 = vpop.eup %3170 }
 0x9e3   : > { %v1443_v30 = vmul.f32 %v3171_v29, %v1429_v54  ;;  %v1448_v31 = vmul.f32 %v1447_v25, %v1442_v28 }
 0x9e5   : > { %v1449_v32 = vmul.f32 %v1447_v25, %v1443_v30  ;;  %v3841_v33 = vadd.f32 %v1453_v63, %v1448_v31 }
 0x9e7   : > { %v3843_v34 = vadd.f32 %v1453_v63, %v1449_v32 }
 0x9e9   : > { %v1458_v0 = vpack.c.bf16 %v3843_v34, %v3841_v33 }
 0x9eb   : > { %1589 = vmatmul.mubr.bf16.vlgmr.msra.gmra.mrb[16].mxu0 %v1458_v0  ;;  %1731 = vmatmul.mubr.bf16.vlgmr.msra.gmra.mrb[16].mxu1 %v1458_v0 }
 0x9ec   : > { %2837 = vmatpush3.bf16.xpose.msra.mxu0 %v1458_v0  ;;  %2843 = vmatpush3.bf16.xpose.msra.mxu1 %v1458_v0 }
 0x9ed   : > { %2838 = vmatprep.mubr.msk.bf16.mxu0 %vm3433_vm0, %v3432_v43  ;;  %2844 = vmatprep.mubr.msk.bf16.mxu1 %vm3433_vm0, %v3432_v43 }
 0x9ee   : > { %2848 = vmatprep.subr.bf16.mxu0 %v3432_v43  ;;  %2854 = vmatprep.subr.bf16.mxu1 %v3432_v43 }
 0xabe   : > { %v1590_v11 = vpop.f32.mrb[16].mxu0  ;;  %v1732_v35 = vpop.f32.mrb[16].mxu1 }
 0xabf   : > { %v1592_v36 = vpop.f32.mrb[17].mxu0  ;;  %v1734_v37 = vpop.f32.mrb[17].mxu1 }
 0xac0   : > { %v1594_v38 = vpop.f32.mrb[18].mxu0  ;;  %v1736_v39 = vpop.f32.mrb[18].mxu1 }
 0xac1   : > { %v1599_v5 = vpack.c.bf16 %v1594_v38, %v1590_v11  ;;  %v1741_v40 = vpack.c.bf16 %v1736_v39, %v1732_v35  ;;  %v1596_v6 = vpop.f32.mrb[19].mxu0  ;;  %v1738_v41 = vpop.f32.mrb[19].mxu1 }
 0xac2   : > { %v1600_v44 = vpack.c.bf16 %v1596_v6, %v1592_v36  ;;  %v1742_v45 = vpack.c.bf16 %v1738_v41, %v1734_v37 }
 0xac3   : > { %2839 = vmatmul.mubr.bf16.vlgmr.msra.gmra.mrb[20].mxu0 %v1599_v5 }
 0xac4   : > { %2845 = vmatmul.mubr.bf16.vlgmr.msra.gmra.mrb[20].mxu1 %v1600_v44  ;;  %2849 = vmatpush3.bf16.msra.mxu0 %v1742_v45 }
 0xac5   : > { %2855 = vmatpush3.bf16.msra.mxu1 %v1741_v40  ;;  %2856 = vmatprep.mubr.msk.bf16.mxu1 %vm3433_vm0, %v3432_v43 }
 0xac6   : > { %2850 = vmatprep.mubr.msk.bf16.mxu0 %vm3433_vm0, %v3432_v43 }
 0xb96   : > { %v1777_v46 = vpop.f32.mrb[20].mxu0 }
 0xb97   : > { %v1778_v47 = vadd.f32 %v3780_v14, %v1777_v46  ;;  %v2840_v48 = vpop.f32.mrb[21].mxu0  ;;  %v1841_v49 = vpop.f32.mrb[20].mxu1  ;;  %v3875_v46 = vld [vmem:[%s3973_s8 + $0x8] sm:$0x3f] }
 0xb98   : > { %v1780_v50 = vpop.f32.mrb[22].mxu0  ;;  %v2846_v53 = vpop.f32.mrb[21].mxu1  ;;  %v1842_v54 = vadd.f32 %v3780_v14, %v1841_v49 }
 0xb99   : > { %v1781_v55 = vadd.f32 %v3780_v14, %v1780_v50  ;;  %v2841_v56 = vpop.f32.mrb[23].mxu0  ;;  %v1844_v58 = vpop.f32.mrb[22].mxu1  ;;  %v1784_v60 = vsel %vm839_vm1, %v1778_v47, -inf  ;;  %v1964_v53 = vrot.slane %v3875_v46, %v3744_v52 }
 0xb9a   : > { %1785 = vmax.xlane.f32.xlu0 %v1784_v60  ;;  %v2847_v61 = vpop.f32.mrb[23].mxu1  ;;  %v1845_v62 = vadd.f32 %v3780_v14, %v1844_v58  ;;  %v1848_v2 = vsel %vm839_vm1, %v1842_v54, -inf }
 0xb9b   : > { %v1787_v1 = vsel %vm839_vm1, %v1781_v55, -inf }
 0xb9c   : > { %1788 = vmax.xlane.f32.xlu1 %v1787_v1  ;;  %v1851_v3 = vsel %vm839_vm1, %v1845_v62, -inf  ;;  %v3098_v1 = vld [vmem:[#allocation8 + $0x84] ss:$8 sps:$4 sm:$0xff]  }
 0xb9d   : > { %2112 = vmatprep.subr.bf16.mxu0 %v3098_v1 }
 0xb9e   : > { %1849 = vmax.xlane.f32.xlu0 %v1848_v2  ;;  %v3101_v2 = vld [vmem:[#allocation8 + $0x94] ss:$8 sps:$4 sm:$0xff]  }
 0xba0   : > { %1852 = vmax.xlane.f32.xlu1 %v1851_v3  ;;  %v3099_v3 = vld [vmem:[#allocation8 + $0x90] ss:$8 sps:$4 sm:$0xff]  }
 0xc27   : > { %v1786_v4 = vpop.xlane.xlu0 %1785 }
 0xc28   : > { %v1790_v7 = vsub.f32 %v1778_v47, %v1786_v4 }
 0xc29   : > { %v1789_v8 = vpop.xlane.xlu1 %1788 }
 0xc2a   : > { %v1792_v9 = vmul.f32 1.442695, %v1790_v7  ;;  %v1791_v10 = vsub.f32 %v1781_v55, %v1789_v8 }
 0xc2b   : > { %v1850_v12 = vpop.xlane.xlu0 %1849 }
 0xc2c   : > { %3172 = vpow2.f32 %v1792_v9  ;;  %v1794_v13 = vmul.f32 1.442695, %v1791_v10  ;;  %v1854_v15 = vsub.f32 %v1842_v54, %v1850_v12 }
 0xc2d   : > { %v1853_v16 = vpop.xlane.xlu1 %1852 }
 0xc2e   : > { %3174 = vpow2.f32 %v1794_v13  ;;  %v1856_v14 = vmul.f32 1.442695, %v1854_v15  ;;  %v1855_v17 = vsub.f32 %v1845_v62, %v1853_v16  ;;  %v3096_v62 = vld [vmem:[#allocation8 + $0x80] ss:$8 sps:$4 sm:$0xff]   ;;  %v3104_v13 = vld [vmem:[#allocation8 + $0xa4] ss:$8 sps:$4 sm:$0xff]  }
 0xc2f   : > { %v3102_v15 = vld [vmem:[#allocation8 + $0xa0] ss:$8 sps:$4 sm:$0xff]   ;;  %v3107_v16 = vld [vmem:[#allocation8 + $0xb4] ss:$8 sps:$4 sm:$0xff]  }
 0xc30   : > { %3176 = vpow2.f32 %v1856_v14  ;;  %v1858_v18 = vmul.f32 1.442695, %v1855_v17  ;;  %v3105_v14 = vld [vmem:[#allocation8 + $0xb0] ss:$8 sps:$4 sm:$0xff]   ;;  %v3110_v17 = vld [vmem:[#allocation8 + $0xc4] ss:$8 sps:$4 sm:$0xff]  }
 0xc32   : > { %3178 = vpow2.f32 %v1858_v18  ;;  %v3108_v18 = vld [vmem:[#allocation8 + $0xc0] ss:$8 sps:$4 sm:$0xff]  }
 0xc36   : > { %v3173_v19 = vpop.eup %3172 }
 0xc37   : > { %v1796_v20 = vsel %vm839_vm1, %v3173_v19, 0.0 }
 0xc38   : > { %v3175_v22 = vpop.eup %3174  ;;  %1797 = vadd.xlane.f32.xlu0 %v1796_v20  ;;  %v3111_v20 = vld [vmem:[#allocation8 + $0xd0] ss:$8 sps:$4 sm:$0xff]  }
 0xc39   : > { %v1799_v23 = vsel %vm839_vm1, %v3175_v22, 0.0 }
 0xc3a   : > { %v3177_v25 = vpop.eup %3176  ;;  %1800 = vadd.xlane.f32.xlu1 %v1799_v23  ;;  %v3114_v23 = vld [vmem:[#allocation8 + $0xe0] ss:$8 sps:$4 sm:$0xff]  }
 0xc3b   : > { %v1860_v27 = vsel %vm839_vm1, %v3177_v25, 0.0 }
 0xc3c   : > { %v3179_v28 = vpop.eup %3178  ;;  %1861 = vadd.xlane.f32.xlu0 %v1860_v27  ;;  %v3117_v27 = vld [vmem:[#allocation8 + $0xf0] ss:$8 sps:$4 sm:$0xff]  }
 0xc3d   : > { %v1863_v29 = vsel %vm839_vm1, %v3179_v28, 0.0 }
 0xc3e   : > { %1864 = vadd.xlane.f32.xlu1 %v1863_v29 }
 0xcc5   : > { %v1798_v30 = vpop.xlane.xlu0 %1797 }
 0xcc6   : > { %3180 = vrcp.f32 %v1798_v30 }
 0xcc7   : > { %v1801_v31 = vpop.xlane.xlu1 %1800 }
 0xcc8   : > { %3182 = vrcp.f32 %v1801_v31 }
 0xcc9   : > { %v1862_v63 = vpop.xlane.xlu0 %1861 }
 0xcca   : > { %3184 = vrcp.f32 %v1862_v63 }
 0xccb   : > { %v1865_v32 = vpop.xlane.xlu1 %1864 }
 0xccc   : > { %3186 = vrcp.f32 %v1865_v32 }
 0xcd0   : > { %v3181_v0 = vpop.eup %3180 }
 0xcd1   : > { %v1804_v35 = vmul.f32 %v3181_v0, %v3173_v19  ;;  %v3113_v19 = vld [vmem:[#allocation8 + $0xd4] ss:$8 sps:$4 sm:$0xff]   ;;  %v1992_v0 = vrot.slane %v3875_v46, %v3752_v57 }
 0xcd2   : > { %v3183_v11 = vpop.eup %3182 }
 0xcd3   : > { %v1805_v36 = vmul.f32 %v3183_v11, %v3175_v22  ;;  %v3116_v22 = vld [vmem:[#allocation8 + $0xe4] ss:$8 sps:$4 sm:$0xff]  }
 0xcd4   : > { %v3185_v37 = vpop.eup %3184 }
 0xcd5   : > { %v1806_v38 = vpack.c.bf16 %v1805_v36, %v1804_v35  ;;  %v1868_v5 = vmul.f32 %v3185_v37, %v3177_v25  ;;  %v3119_v25 = vld [vmem:[#allocation8 + $0xf4] ss:$8 sps:$4 sm:$0xff]  }
 0xcd6   : > { %v3187_v39 = vpop.eup %3186 }
 0xcd7   : > { %v1869_v40 = vmul.f32 %v3187_v39, %v3179_v28  ;;  %2857 = vmatmul.mubr.msk.bf16.vlgmr.msra.gmra.mrb[24].mxu1 %vm839_vm1, %v1806_v38  ;;  %v1998_v39 = vrot.slane %v3875_v46, %v1053_v59  ;;  %v3124_v59 = vld [vmem:[#allocation10 + $0xd0] sm:$0xff]  }
 0xcd9   : > { %v1870_v6 = vpack.c.bf16 %v1869_v40, %v1868_v5 }
 0xcdb   : > { %2851 = vmatmul.mubr.msk.bf16.vlgmr.msra.gmra.mrb[24].mxu0 %vm839_vm1, %v1870_v6 }
 0xcdc   : > { %2144 = vmatprep.mubr.bf16.mxu0 %v3431_v42  ;;  %2113 = vmatpush1.bf16.msra.mxu0 %v3096_v62  ;;  %v2711_v62 = vld [vmem:[%s3971_s6 + $0x2] sm:$0x3] }
 0xcdd   : > { %2114 = vmatprep.subr.bf16.mxu0 %v3101_v2  ;;  %v2025_v1 = vrot.slane %v2711_v62, %v3744_v52  ;;  %v2029_v2 = vrot.slane %v2711_v62, %v3752_v57 }
 0xce0   : > { %2115 = vmatpush1.bf16.msra.mxu0 %v3099_v3 }
 0xce1   : > { %2116 = vmatprep.subr.bf16.mxu0 %v3104_v13 }
 0xce4   : > { %2117 = vmatpush1.bf16.msra.mxu0 %v3102_v15 }
 0xce5   : > { %2118 = vmatprep.subr.bf16.mxu0 %v3107_v16 }
 0xce8   : > { %2119 = vmatpush1.bf16.msra.mxu0 %v3105_v14 }
 0xce9   : > { %2120 = vmatprep.subr.bf16.mxu0 %v3110_v17 }
 0xcec   : > { %2121 = vmatpush1.bf16.msra.mxu0 %v3108_v18 }
 0xced   : > { %2122 = vmatprep.subr.bf16.mxu0 %v3113_v19 }
 0xcf0   : > { %2123 = vmatpush1.bf16.msra.mxu0 %v3111_v20 }
 0xcf1   : > { %2124 = vmatprep.subr.bf16.mxu0 %v3116_v22 }
 0xcf4   : > { %2125 = vmatpush1.bf16.msra.mxu0 %v3114_v23 }
 0xcf5   : > { %2126 = vmatprep.subr.bf16.mxu0 %v3119_v25 }
 0xcf8   : > { %2127 = vmatpush1.bf16.msra.mxu0 %v3117_v27 }
 0xcf9   : > { %2860 = vmatprep.subr.bf16.mxu0 %v3432_v43 }
 0xdaa   : > { %v1952_v41 = vpop.f32.mrb[24].mxu1 }
 0xdab   : > { %v2858_v44 = vpop.f32.mrb[25].mxu1 }
 0xdac   : > { %v1955_v45 = vpop.f32.mrb[26].mxu1  ;;  %v3120_v44 = vld [vmem:[#allocation10 + $0xc0] sm:$0xff]  }
 0xdad   : > { %v2859_v47 = vpop.f32.mrb[27].mxu1  ;;  %2788 = vmatprep.subr.bf16.mxu1 %v3120_v44 }
 0xdae   : > { %v1908_v48 = vpop.f32.mrb[24].mxu0  ;;  %v3122_v47 = vld [vmem:[#allocation10 + $0xc8] sm:$0xff]  }
 0xdaf   : > { %v1953_v49 = vadd.f32 %v1952_v41, %v1908_v48  ;;  %v2852_v50 = vpop.f32.mrb[25].mxu0  ;;  %v3123_v48 = vld [vmem:[#allocation10 + $0x88] sm:$0xff]  }
 0xdb0   : > { %v1911_v54 = vpop.f32.mrb[26].mxu0  ;;  %v3126_v50 = vld [vmem:[#allocation10 + $0xd8] sm:$0xff]  }
 0xdb1   : > { %v1959_v55 = vadd.f32 %v1953_v49, %v3841_v33  ;;  %v1956_v56 = vadd.f32 %v1955_v45, %v1911_v54  ;;  %v2853_v42 = vpop.f32.mrb[27].mxu0  ;;  %v3121_v45 = vld [vmem:[#allocation10 + $0x80] sm:$0xff]   ;;  %v3125_v49 = vld [vmem:[#allocation10 + $0x90] sm:$0xff]  }
 0xdb2   : > { %2789 = vmatpush3.bf16.msra.mxu1 %v3121_v45  ;;  %v3128_v54 = vld [vmem:[#allocation10 + $0xe0] sm:$0xff]   ;;  %v3132_v42 = vld [vmem:[#allocation10 + $0xf0] sm:$0xff]  }
 0xdb3   : > { %v1960_v58 = vadd.f32 %v1956_v56, %v3843_v34  ;;  %v1965_v60 = vadd.f32 %v1964_v53, %v1959_v55  ;;  %2790 = vmatprep.subr.bf16.mxu1 %v3122_v47  ;;  %v3129_v55 = vld [vmem:[#allocation10 + $0xa0] sm:$0xff]   ;;  %v3131_v56 = vld [vmem:[#allocation10 + $0xa8] sm:$0xff]  }
 0xdb5   : > { %1967 = vadd.xlane.f32.xlu0 %v1965_v60  ;;  %v1966_v61 = vadd.f32 %v1964_v53, %v1960_v58  ;;  %v3127_v53 = vld [vmem:[#allocation10 + $0x98] sm:$0xff]   ;;  %v3133_v58 = vld [vmem:[#allocation10 + $0xb0] sm:$0xff]  }
 0xdb6   : > { %2791 = vmatpush3.bf16.msra.mxu1 %v3123_v48 }
 0xdb7   : > { %1969 = vadd.xlane.f32.xlu1 %v1966_v61  ;;  %2792 = vmatprep.subr.bf16.mxu1 %v3124_v59 }
 0xdba   : > { %2793 = vmatpush3.bf16.msra.mxu1 %v3125_v49 }
 0xdbb   : > { %2794 = vmatprep.subr.bf16.mxu1 %v3126_v50 }
 0xdbe   : > { %2795 = vmatpush3.bf16.msra.mxu1 %v3127_v53 }
 0xdbf   : > { %2796 = vmatprep.subr.bf16.mxu1 %v3128_v54 }
 0xdc2   : > { %2797 = vmatpush3.bf16.msra.mxu1 %v3129_v55  ;;  %v2229_v55 = vrot.slane %v3875_v46, %v1281_v21 }
 0xe42   : > { %v1968_v4 = vpop.xlane.xlu0 %1967 }
 0xe43   : > { %v1971_v7 = vmul.f32 0.0078125, %v1968_v4 }
 0xe44   : > { %v1970_v8 = vpop.xlane.xlu1 %1969 }
 0xe45   : > { %v1973_v33 = vsub.f32 %v1965_v60, %v1971_v7  ;;  %v1972_v9 = vmul.f32 0.0078125, %v1970_v8  ;;  %v3134_v60 = vld [vmem:[#allocation10 + $0xf8] sm:$0xff]  }
 0xe47   : > { %v1974_v10 = vsub.f32 %v1966_v61, %v1972_v9  ;;  %v1975_v12 = vmul.f32 %v1973_v33, %v1973_v33  ;;  %v3135_v61 = vld [vmem:[#allocation10 + $0xb8] sm:$0xff]  }
 0xe49   : > { %1977 = vadd.xlane.f32.xlu0 %v1975_v12  ;;  %v1976_v34 = vmul.f32 %v1974_v10, %v1974_v10 }
 0xe4b   : > { %1979 = vadd.xlane.f32.xlu1 %v1976_v34 }
 0xed6   : > { %v1978_v28 = vpop.xlane.xlu0 %1977 }
 0xed7   : > { %v1981_v29 = vmul.f32 0.0078125, %v1978_v28 }
 0xed8   : > { %v1980_v30 = vpop.xlane.xlu1 %1979 }
 0xed9   : > { %v1983_v31 = vadd.f32 1e-12, %v1981_v29  ;;  %v1982_v63 = vmul.f32 0.0078125, %v1980_v30 }
 0xedb   : > { %3188 = vrsqrt.f32 %v1983_v31  ;;  %v1984_v32 = vadd.f32 1e-12, %v1982_v63 }
 0xedd   : > { %3190 = vrsqrt.f32 %v1984_v32 }
 0xee5   : > { %v3189_v11 = vpop.eup %3188 }
 0xee6   : > { %v1987_v35 = vmul.f32 %v3189_v11, %v1973_v33 }
 0xee7   : > { %v3191_v36 = vpop.eup %3190 }
 0xee8   : > { %v1988_v37 = vmul.f32 %v3191_v36, %v1974_v10  ;;  %v1993_v38 = vmul.f32 %v1992_v0, %v1987_v35 }
 0xeea   : > { %v1994_v5 = vmul.f32 %v1992_v0, %v1988_v37  ;;  %v3887_v40 = vadd.f32 %v1998_v39, %v1993_v38 }
 0xeec   : > { %v3889_v6 = vadd.f32 %v1998_v39, %v1994_v5 }
 0xeee   : > { %v2001_v41 = vpack.c.bf16 %v3889_v6, %v3887_v40 }
 0xef0   : > { %2145 = vmatmul.mubr.bf16.vlgmr.msra.gmra.mrb[28].mxu0 %v2001_v41 }
 0xef1   : > { %2862 = vmatprep.mubr.msk.bf16.mxu0 %vm3433_vm0, %v3432_v43  ;;  %v3130_v43 = vld [vmem:[#allocation10 + $0xe8] sm:$0xff]  }
 0xef2   : > { %2798 = vmatprep.subr.bf16.mxu1 %v3130_v43 }
 0xef3   : > { %2799 = vmatpush3.bf16.msra.mxu1 %v3131_v56 }
 0xef4   : > { %2800 = vmatprep.subr.bf16.mxu1 %v3132_v42 }
 0xef7   : > { %2801 = vmatpush3.bf16.msra.mxu1 %v3133_v58 }
 0xef8   : > { %2802 = vmatprep.subr.bf16.mxu1 %v3134_v60 }
 0xefb   : > { %2803 = vmatpush3.bf16.msra.mxu1 %v3135_v61 }
 0xfc3   : > { %v2146_v3 = vpop.f32.mrb[28].mxu0 }
 0xfc4   : > { %v2147_v4 = vadd.f32 %v2146_v3, %v2025_v1  ;;  %v2148_v7 = vpop.f32.mrb[29].mxu0 }
 0xfc5   : > { %v2149_v8 = vadd.f32 %v2148_v7, %v2029_v2  ;;  %v2150_v33 = vpop.f32.mrb[30].mxu0 }
 0xfc6   : > { %v2159_v9 = vmul.f32 0.044715, %v2147_v4  ;;  %v2151_v10 = vadd.f32 %v2150_v33, %v2025_v1  ;;  %v2152_v12 = vpop.f32.mrb[31].mxu0  ;;  %v2155_v38 = vmul.f32 0.5, %v2147_v4 }
 0xfc7   : > { %v2160_v34 = vmul.f32 0.044715, %v2149_v8  ;;  %v2153_v13 = vadd.f32 %v2152_v12, %v2029_v2  ;;  %v2156_v41 = vmul.f32 0.5, %v2149_v8 }
 0xfc8   : > { %v2163_v15 = vmul.f32 %v2159_v9, %v2147_v4  ;;  %v2161_v16 = vmul.f32 0.044715, %v2151_v10  ;;  %v2157_v39 = vmul.f32 0.5, %v2151_v10 }
 0xfc9   : > { %v2164_v14 = vmul.f32 %v2160_v34, %v2149_v8  ;;  %v2162_v17 = vmul.f32 0.044715, %v2153_v13  ;;  %v2158_v44 = vmul.f32 0.5, %v2153_v13 }
 0xfca   : > { %v2167_v18 = vmul.f32 %v2163_v15, %v2147_v4  ;;  %v2165_v19 = vmul.f32 %v2161_v16, %v2151_v10 }
 0xfcb   : > { %v2168_v20 = vmul.f32 %v2164_v14, %v2149_v8  ;;  %v2166_v52 = vmul.f32 %v2162_v17, %v2153_v13 }
 0xfcc   : > { %v2171_v22 = vadd.f32 %v2167_v18, %v2147_v4  ;;  %v2169_v57 = vmul.f32 %v2165_v19, %v2151_v10 }
 0xfcd   : > { %v2170_v23 = vmul.f32 %v2166_v52, %v2153_v13  ;;  %v2172_v25 = vadd.f32 %v2168_v20, %v2149_v8  ;;  %v2400_v52 = vrot.slane %v3875_v46, %v1452_v26 }
 0xfce   : > { %v2175_v27 = vmul.f32 0.7978846, %v2171_v22  ;;  %v2173_v28 = vadd.f32 %v2169_v57, %v2151_v10 }
 0xfcf   : > { %v2174_v29 = vadd.f32 %v2170_v23, %v2153_v13  ;;  %v2176_v30 = vmul.f32 0.7978846, %v2172_v25  ;;  %v513_v25 = vld [vmem:[%s466_s9] sm:$0xf] }
 0xfd0   : > { %3192 = vtanh.f32 %v2175_v27  ;;  %v2177_v31 = vmul.f32 0.7978846, %v2173_v28 }
 0xfd1   : > { %v2178_v63 = vmul.f32 0.7978846, %v2174_v29  ;;  %3194 = vtanh.f32 %v2176_v30 }
 0xfd2   : > { %3196 = vtanh.f32 %v2177_v31 }
 0xfd3   : > { %3198 = vtanh.f32 %v2178_v63 }
 0xfda   : > { %v3193_v32 = vpop.eup %3192 }
 0xfdb   : > { %v3195_v0 = vpop.eup %3194  ;;  %v2183_v11 = vadd.f32 1.0, %v3193_v32 }
 0xfdc   : > { %v3197_v35 = vpop.eup %3196  ;;  %v2184_v36 = vadd.f32 1.0, %v3195_v0 }
 0xfdd   : > { %v3199_v37 = vpop.eup %3198  ;;  %v2185_v5 = vadd.f32 1.0, %v3197_v35  ;;  %v2187_v47 = vmul.f32 %v2183_v11, %v2155_v38 }
 0xfde   : > { %v2186_v45 = vadd.f32 1.0, %v3199_v37  ;;  %v2188_v59 = vmul.f32 %v2184_v36, %v2156_v41 }
 0xfdf   : > { %v2189_v48 = vmul.f32 %v2185_v5, %v2157_v39 }
 0xfe0   : > { %v2190_v49 = vmul.f32 %v2186_v45, %v2158_v44 }
 0xfe1   : > { %v2191_v50 = vpack.c.bf16 %v2189_v48, %v2187_v47 }
 0xfe2   : > { %v2192_v53 = vpack.c.bf16 %v2190_v49, %v2188_v59 }
 0xfe4   : > { %2358 = vmatprep.mubr.bf16.mxu1 %v2192_v53 }
 0xfe5   : > { %2359 = vmatmul.mubr.bf16.vlgmr.msra.gmra.mrb[28].mxu1 %v2191_v50 }
0x10b8   : > { %v2804_v54 = vpop.f32.mrb[28].mxu1 }
0x10b9   : > { %v2805_v43 = vpop.f32.mrb[29].mxu1 }
0x10ba   : > { %v2806_v56 = vadd.f32 %v2805_v43, %v2804_v54  ;;  %v2807_v42 = vpop.f32.mrb[30].mxu1 }
0x10bb   : > { %v2808_v58 = vpop.f32.mrb[31].mxu1 }
0x10bc   : > { %v2361_v60 = vadd.f32 %v2806_v56, %v2229_v55  ;;  %v2809_v61 = vadd.f32 %v2808_v58, %v2807_v42 }
0x10be   : > { %v2364_v62 = vadd.f32 %v2809_v61, %v2229_v55  ;;  %v2367_v1 = vadd.f32 %v2361_v60, %v3887_v40 }
0x10c0   : > { %2369 = vadd.xlane.f32.xlu0 %v2367_v1  ;;  %v2368_v2 = vadd.f32 %v2364_v62, %v3889_v6  ;;  %v2394_v6 = vrot.slane %v3875_v46, %v1446_v24 }
0x10c2   : > { %2371 = vadd.xlane.f32.xlu1 %v2368_v2 }
0x114d   : > { %v2370_v3 = vpop.xlane.xlu0 %2369 }
0x114e   : > { %v2373_v4 = vmul.f32 0.0078125, %v2370_v3 }
0x114f   : > { %v2372_v7 = vpop.xlane.xlu1 %2371 }
0x1150   : > { %v2375_v8 = vsub.f32 %v2367_v1, %v2373_v4  ;;  %v2374_v33 = vmul.f32 0.0078125, %v2372_v7 }
0x1152   : > { %v2376_v9 = vsub.f32 %v2368_v2, %v2374_v33  ;;  %v2377_v21 = vmul.f32 %v2375_v8, %v2375_v8 }
0x1154   : > { %2379 = vadd.xlane.f32.xlu0 %v2377_v21  ;;  %v2378_v10 = vmul.f32 %v2376_v9, %v2376_v9 }
0x1156   : > { %2381 = vadd.xlane.f32.xlu1 %v2378_v10 }
0x11e1   : > { %v2380_v12 = vpop.xlane.xlu0 %2379 }
0x11e2   : > { %v2383_v34 = vmul.f32 0.0078125, %v2380_v12 }
0x11e3   : > { %v2382_v13 = vpop.xlane.xlu1 %2381 }
0x11e4   : > { %v2385_v15 = vadd.f32 1e-12, %v2383_v34  ;;  %v2384_v40 = vmul.f32 0.0078125, %v2382_v13 }
0x11e6   : > { %3200 = vrsqrt.f32 %v2385_v15  ;;  %v2386_v16 = vadd.f32 1e-12, %v2384_v40 }
0x11e8   : > { %3202 = vrsqrt.f32 %v2386_v16 }
0x11f0   : > { %v3201_v14 = vpop.eup %3200 }
0x11f1   : > { %v2389_v17 = vmul.f32 %v3201_v14, %v2375_v8 }
0x11f2   : > { %v3203_v18 = vpop.eup %3202 }
0x11f3   : > { %v2390_v19 = vmul.f32 %v3203_v18, %v2376_v9  ;;  %v2395_v20 = vmul.f32 %v2394_v6, %v2389_v17 }
0x11f5   : > { %v2396_v22 = vmul.f32 %v2394_v6, %v2390_v19  ;;  %v2401_v57 = vadd.f32 %v2400_v52, %v2395_v20 }
0x11f7   : > { %v2402_v23 = vadd.f32 %v2400_v52, %v2396_v22 }
0x11f9   : > { %v2403_v24 = vpack.c.bf16 %v2402_v23, %v2401_v57 }
0x11fb   : > { %2861 = vmatpush3.bf16.msra.mxu0 %v2403_v24 }
0x11fe   : > { %2863 = vmatmul.mubr.msk.bf16.vlgmr.msra.gmra.mrb[32].mxu0 %vm839_vm1, %v513_v25 }
0x12d1   : > { %v2441_v51 = vpop.f32.mrb[32].mxu0 }
0x12d2   : > { %2447 = vst [vmem:[%s459_s12] sm:$0xff] %v2441_v51  ;;  %v2864_v26 = vpop.f32.mrb[33].mxu0 }
0x12d3   : > { %v2444_v46 = vpop.f32.mrb[34].mxu0 }
0x12d4   : > { %3359 = shalt.err (!%p3356_p9)
}
0x12d5   : > { %s3360_s18 = scalar_lea.hbm %s3923_s22, 128  ;;  %s3364_s10 = scalar_lea.hbm %s4001_s23, 256 }
0x12d6   : > { %p3361_p0 = scmp.ne.s32.totalorder %s3923_s22, %s3360_s18  ;;  %p3365_p8 = scmp.lt.u32.totalorder %s3923_s22, %s4001_s23 }
0x12d7   : > { %p3366_p6 = scmp.lt.u32.totalorder %s3364_s10, %s3360_s18  ;;  %p3368_p5 = scmp.lt.u32.totalorder %s3360_s18, %s3923_s22 }
0x12d8   : > { %p3362_p4 = pnand %p3361_p0, %p3661_p3 }
0x12d9   : > { %p3367_p10 = por %p3366_p6, %p3365_p8 }
0x12da   : > { %p3363_p11 = pneg %p3362_p4 }
0x12db   : > { %p3369_p7 = por %p3368_p5, %p3367_p10 }
0x12dd   : > { %p3370_p12 = pnand %p3369_p7, %p3363_p11 }
0x12df   : > { %3373 = shalt.err (!%p3370_p12)
}
0x12e0   : > { %2884 = dma.vmem_to_hbm [thread:$0]  (%p3661_p3), %s3918_s29, 128, %s3923_s22, %s2449_s24   ;;  %v2865_v27 = vpop.f32.mrb[35].mxu0 }
0x12e1 PF: > { %s4002_s30 = sld [smem:[#allocation16_spill]]  ;;  %s4003_s28 = sld [smem:[#allocation17_spill]] }
0x12e2   : > { %p4005_p2 = scmp.ge.s32.totalorder %s3420_s16, 2 }
0x12e7   : > { %s2474_s19 = sand.u32 1, %s4002_s30   ;;  %p4004_p1 = scmp.ne.s32.totalorder %s4003_s28, 0 }
0x12e8   : > { %s2475_s17 = scalar_lea.sflag [#allocation4], %s2474_s19 }
0x12e9   : > { %p2904_p13 = pnand %p4005_p2, %p4004_p1 }
0x12eb   : > { %3403 = dma.done.wait (!%p2904_p13), %s2475_s17, 128  }
0x12ec   : > { %3405 = vsyncadd (!%p2904_p13), %s2475_s17, 4294967168  ;;  %p25_p9 = scmp.ge.s32.totalorder %s3648_s20, 4   ;;  %s4006_s13 = smov %s3412_s14 }
0x12ed   : > { %s4007_s14 = smov %s3416_s15  ;;  %s4008_s15 = smov %s3657_s25 }
0x12ee   : > { %s4009_s16 = smov %s3648_s20  ;;  %27 = sbr.rel (!%p25_p9) target bundleno = 10 (0xa), region = 133 }
0x12f5   :  { %2480 = vsyncpa [#allocation3], 1 }
0x12f6   :  { %2482 = vsyncpa [#allocation3 + $0x1], 1 }
0x12f7   :  { %2483 = vsyncpa [#allocation6], 1 }
0x12f8   :  { %2484 = vsyncpa [#allocation9], 1 }
0x12f9   :  { %2485 = vsyncpa [#allocation4], 1 }
0x12fa   :  { %2487 = vsyncpa [#allocation4 + $0x1], 1 }

</bundles_post_ra>
